<compile_context>
chip_gen: v7x
topology: tpu7x:2x2x1
jax: 0.10.0
libtpu: 0.0.40
codegen_flags: <defaults>
</compile_context>

<pallas_src>
import functools

import jax
import jax.numpy as jnp
from jax.experimental import pallas as pl
from jax.experimental.pallas import tpu as pltpu


def _round_up(x, m):
    return ((x + m - 1) // m) * m


# ---------------------------------------------------------------------------
# Compiler parameters (generation-aware VMEM budget, computed lazily)
# ---------------------------------------------------------------------------
@functools.lru_cache(maxsize=None)
def _compiler_params(n_axes):
    try:
        cap = int(pltpu.get_tpu_info().vmem_capacity_bytes)
        limit = min(cap * 3 // 4, 96 * 1024 * 1024)
    except Exception:
        limit = 48 * 1024 * 1024
    return pltpu.CompilerParams(
        dimension_semantics=("parallel",) * n_axes,
        vmem_limit_bytes=limit,
    )


# ---------------------------------------------------------------------------
# Pallas kernels
# ---------------------------------------------------------------------------
def _conv_kernel(*refs, offsets, m2, relu, has_res):
    """Fused conv (single big-K matmul) + folded BN bias (+residual) (+ReLU).

    x_ref   : (Lf, Cin)  bf16  flat padded image (or pre-built im2col slab)
    w_ref   : (K, Ct)    bf16  scale-folded weights (K = taps*Cin)
    b_ref   : (1, Ct)    f32   folded-BN bias
    r_ref   : (m2, Ct)   bf16  residual (optional)
    o_ref   : (m2, Ct)   bf16  output on the padded-width grid
    slab_ref: (m2, K)    bf16  VMEM scratch (only when len(offsets) > 1)
    """
    n_taps = len(offsets)
    x_ref, w_ref, b_ref = refs[:3]
    rest = refs[3:]
    r_ref = rest[0] if has_res else None
    o_ref = rest[1] if has_res else rest[0]
    slab_ref = rest[-1] if n_taps > 1 else None

    if n_taps > 1:
        cin = x_ref.shape[-1]
        for t, off in enumerate(offsets):
            # lane-aligned static-slice store (cin % 128 == 0 on this path)
            slab_ref[:, t * cin:(t + 1) * cin] = x_ref[off:off + m2, :]
        slab = slab_ref[...]
    else:
        off0 = offsets[0]
        slab = x_ref[off0:off0 + m2, :]

    out = jnp.dot(slab, w_ref[...], preferred_element_type=jnp.float32)
    out = out + b_ref[...]                               # BN bias in f32
    if has_res:
        out = out + r_ref[...].astype(jnp.float32)
    if relu:
        out = jnp.maximum(out, 0.0)
    o_ref[...] = out.astype(o_ref.dtype)


def _maxpool_taps_kernel(x_ref, o_ref, *, offsets, m2):
    # 3x3/s2 max pool as 9 shifted row-slices of the S2D'd, -inf padded input.
    out = x_ref[offsets[0]:offsets[0] + m2, :]
    for off in offsets[1:]:
        out = jnp.maximum(out, x_ref[off:off + m2, :])
    o_ref[...] = out


def _avgpool_kernel(x_ref, o_ref):
    # x_ref: (1, H*W, C) bf16 -> global average in f32.
    o_ref[...] = jnp.mean(x_ref[...].astype(jnp.float32), axis=1)


# ---------------------------------------------------------------------------
# Wrappers
# ---------------------------------------------------------------------------
def _space_to_depth2(x):
    """(N, H, W, C) -> (N, H/2, W/2, 4C) with channel order (p, q, c)."""
    n, h, w, c = x.shape
    assert h % 2 == 0 and w % 2 == 0, (h, w)
    x = x.reshape(n, h // 2, 2, w // 2, 2, c)
    x = jnp.transpose(x, (0, 1, 3, 2, 4, 5))
    return x.reshape(n, h // 2, w // 2, 4 * c)


def conv_bn(x, cp, relu=True, residual=None):
    """Fused conv + folded BatchNorm (+ residual add) (+ ReLU).

    x: (N, H, W, Cin) bf16 NHWC.  cp: prepared params (see _prep_conv).
    Returns (N, OH, OW, Cout) bf16.
    """
    if cp["s2d"]:
        x = _space_to_depth2(x)
    n, h, w, c = x.shape
    k = cp["k"]
    pt, pb = cp["pad"]
    oh = h + pt + pb - k + 1
    ow = w + pt + pb - k + 1
    wp = _round_up(w + pt + pb, 8)         # padded width, sublane aligned
    m2 = oh * wp                            # outputs on the padded-width grid
    lf = (h + pt + pb + 1) * wp             # +1 row absorbs flat-offset overrun
    cout = cp["bias"].shape[-1]
    kk = k * k
    K = kk * c
    assert cp["w"].shape[0] == K, (cp["w"].shape, K)

    xp = jnp.pad(x, ((0, 0), (pt, pb + 1), (pt, wp - w - pt), (0, 0)))
    xf = xp.reshape(n, lf, c)
    offsets = tuple(di * wp + dj for di in range(k) for dj in range(k))
    assert max(offsets) + m2 <= lf

    # Lane-sparse Cin (conv1: 12, layer1: 64): build the im2col slab
    # wrapper-side so the kernel is a single lane-dense matmul with K=taps*Cin.
    host_im2col = (kk > 1) and (c % 128 != 0)
    if host_im2col:
        xf = jnp.concatenate([xf[:, off:off + m2, :] for off in offsets],
                             axis=-1)
        lf, c_in, offsets = m2, K, (0,)
    else:
        c_in = c

    # Cout-split parallel axis (outer, so the weight is fetched once per tile);
    # gives v7x's second TensorCore work even at batch 1.
    ct = 2 if cout >= 256 else 1
    cout_t = cout // ct

    in_specs = [
        pl.BlockSpec((None, lf, c_in), lambda j, b: (b, 0, 0)),
        pl.BlockSpec((K, cout_t), lambda j, b: (0, j)),
        pl.BlockSpec((1, cout_t), lambda j, b: (0, j)),
    ]
    args = [xf, cp["w"], cp["bias"]]
    has_res = residual is not None
    if has_res:
        r = jnp.pad(residual, ((0, 0), (0, 0), (0, wp - ow), (0, 0)))
        args.append(r.reshape(n, m2, cout))
        in_specs.append(pl.BlockSpec((None, m2, cout_t), lambda j, b: (b, 0, j)))

    scratch_shapes = []
    if len(offsets) > 1:
        scratch_shapes.append(pltpu.VMEM((m2, K), jnp.bfloat16))

    flops = 2 * n * m2 * K * cout
    bytes_accessed = 2 * (n * lf * c_in + K * cout
                          + n * m2 * cout * (2 if has_res else 1)) + 4 * cout
    cost = pl.CostEstimate(flops=int(flops), transcendentals=0,
                           bytes_accessed=int(bytes_accessed))

    out = pl.pallas_call(
        functools.partial(_conv_kernel, offsets=offsets, m2=m2,
                          relu=relu, has_res=has_res),
        out_shape=jax.ShapeDtypeStruct((n, m2, cout), jnp.bfloat16),
        grid=(ct, n),
        in_specs=in_specs,
        out_specs=pl.BlockSpec((None, m2, cout_t), lambda j, b: (b, 0, j)),
        scratch_shapes=tuple(scratch_shapes),
        compiler_params=_compiler_params(2),
        cost_estimate=cost,
    )(*args)
    # drop the garbage columns produced on the padded-width grid
    # (XLA fuses this slice with the following layer's pad into one copy)
    return out.reshape(n, oh, wp, cout)[:, :, :ow, :]


def maxpool_3x3_s2(x):
    """MaxPool2d(kernel=3, stride=2, padding=1) on NHWC bf16 input."""
    n, h, w, c = x.shape
    assert h % 2 == 0 and w % 2 == 0, (h, w)
    oh, ow = h // 2, w // 2
    # space-to-depth with the 4 parity groups kept as a separate leading axis
    y = x.reshape(n, oh, 2, ow, 2, c)
    y = jnp.transpose(y, (0, 2, 4, 1, 3, 5)).reshape(n, 4, oh, ow, c)
    wp = _round_up(ow + 1, 8)
    yp = jnp.pad(y, ((0, 0), (0, 0), (1, 1), (1, wp - ow - 1), (0, 0)),
                 constant_values=-jnp.inf)
    lf = (oh + 2) * wp
    yf = yp.reshape(n, 4 * lf, c)
    m2 = oh * wp
    par = {0: (1, -1), 1: (0, 0), 2: (1, 0)}        # tap di -> (parity, shift)
    offsets = tuple((par[di][0] * 2 + par[dj][0]) * lf
                    + (par[di][1] + 1) * wp + (par[dj][1] + 1)
                    for di in range(3) for dj in range(3))

    cost = pl.CostEstimate(flops=int(9 * n * m2 * c), transcendentals=0,
                           bytes_accessed=int(2 * (n * 4 * lf * c + n * m2 * c)))
    out = pl.pallas_call(
        functools.partial(_maxpool_taps_kernel, offsets=offsets, m2=m2),
        out_shape=jax.ShapeDtypeStruct((n, m2, c), x.dtype),
        grid=(n,),
        in_specs=[pl.BlockSpec((None, 4 * lf, c), lambda b: (b, 0, 0))],
        out_specs=pl.BlockSpec((None, m2, c), lambda b: (b, 0, 0)),
        compiler_params=_compiler_params(1),
        cost_estimate=cost,
    )(yf)
    return out.reshape(n, oh, wp, c)[:, :, :ow, :]


def global_avgpool(x):
    """AdaptiveAvgPool2d((1,1)) on NHWC bf16 -> (N, C) f32."""
    n, h, w, c = x.shape
    xr = x.reshape(n, h * w, c)
    cost = pl.CostEstimate(flops=int(n * h * w * c), transcendentals=0,
                           bytes_accessed=int(2 * n * h * w * c + 4 * n * c))
    return pl.pallas_call(
        _avgpool_kernel,
        out_shape=jax.ShapeDtypeStruct((n, c), jnp.float32),
        grid=(n,),
        in_specs=[pl.BlockSpec((1, h * w, c), lambda b: (b, 0, 0))],
        out_specs=pl.BlockSpec((1, c), lambda b: (b, 0)),
        compiler_params=_compiler_params(1),
        cost_estimate=cost,
    )(xr)


# ---------------------------------------------------------------------------
# ResNet18 feature extractor (= torchvision resnet18 minus the final fc)
# ---------------------------------------------------------------------------
def _basic_block(x, bp):
    identity = x if bp["down"] is None else conv_bn(x, bp["down"], relu=False)
    out = conv_bn(x, bp["conv1"], relu=True)
    out = conv_bn(out, bp["conv2"], relu=True, residual=identity)
    return out


def resnet18_features(params, x_nchw):
    n = x_nchw.shape[0]
    # NCHW (PyTorch) -> NHWC bf16 for the kernels.
    x = jnp.transpose(x_nchw, (0, 2, 3, 1)).astype(jnp.bfloat16)
    x = conv_bn(x, params["conv1"], relu=True)
    x = maxpool_3x3_s2(x)
    for layer in ("layer1", "layer2", "layer3", "layer4"):
        for bp in params[layer]:
            x = _basic_block(x, bp)
    pooled = global_avgpool(x)                       # (N, 512) f32
    return pooled.reshape(n, 512, 1, 1)              # like AdaptiveAvgPool2d(1)


# ---------------------------------------------------------------------------
# Parameter preparation (weights pre-transposed, BN pre-folded, once)
# ---------------------------------------------------------------------------
def _prep_conv(rp):
    """Raw PyTorch-layout conv (Cout, Cin, k, k) + BN scale/bias ->
    scale-folded (K, Cout) bf16 weight (K = taps*Cin_eff) + static geometry.
    Stride-2 convs are rewritten as stride-1 convs on a space-to-depth(2) input."""
    w, scale, bias = rp["w"], rp["scale"], rp["bias"]
    k, pad, stride = rp["k"], rp["pad"], rp["stride"]
    cout, cin = int(w.shape[0]), int(w.shape[1])
    # Fold the BN scale into the weights in f32, before the bf16 cast.
    wt = jnp.transpose(w, (2, 3, 1, 0)) * scale[None, None, None, :]  # (k,k,Ci,Co)
    if stride == 1:
        wk = wt.reshape(k * k * cin, cout)
        keff, pads, s2d = k, (pad, pad), False
    elif stride == 2:
        ct = (pad + 1) // 2
        cb = (k - 1 - pad) // 2
        kn = cb + ct + 1
        wn = jnp.zeros((kn, kn, 2, 2, cin, cout), jnp.float32)
        for ki in range(kn):
            for p in range(2):
                di = 2 * ki + p - 2 * ct + pad
                if not (0 <= di < k):
                    continue
                for kj in range(kn):
                    for q in range(2):
                        dj = 2 * kj + q - 2 * ct + pad
                        if 0 <= dj < k:
                            wn = wn.at[ki, kj, p, q].set(wt[di, dj])
        wk = wn.reshape(kn * kn * 4 * cin, cout)
        keff, pads, s2d = kn, (ct, cb), True
    else:
        raise NotImplementedError(f"stride={stride}")
    return {
        "w": wk.astype(jnp.bfloat16),
        "bias": bias.reshape(1, cout).astype(jnp.float32),
        "k": keff, "pad": pads, "s2d": s2d,
    }


def init_raw_params(key):
    """Deterministic synthetic parameters in raw (PyTorch-like) layout."""
    keys = iter(jax.random.split(key, 256))

    def conv_raw(cout, cin, k, pad, stride):
        fan_in = cin * k * k
        w = (jax.random.normal(next(keys), (cout, cin, k, k), jnp.float32)
             * (2.0 / fan_in) ** 0.5)
        gamma = 1.0 + 0.1 * jax.random.normal(next(keys), (cout,), jnp.float32)
        beta = 0.1 * jax.random.normal(next(keys), (cout,), jnp.float32)
        mean = 0.1 * jax.random.normal(next(keys), (cout,), jnp.float32)
        var = jnp.abs(1.0 + 0.1 * jax.random.normal(next(keys), (cout,),
                                                    jnp.float32))
        scale = gamma / jnp.sqrt(var + 1e-5)
        bias = beta - mean * scale
        return {"w": w, "scale": scale, "bias": bias,
                "k": k, "pad": pad, "stride": stride}

    def block(cin, cout, stride):
        return {
            "conv1": conv_raw(cout, cin, 3, 1, stride),
            "conv2": conv_raw(cout, cout, 3, 1, 1),
            "down": (conv_raw(cout, cin, 1, 0, stride)
                     if (stride != 1 or cin != cout) else None),
        }

    return {
        "conv1": conv_raw(64, 3, 7, 3, 2),
        "layer1": [block(64, 64, 1), block(64, 64, 1)],
        "layer2": [block(64, 128, 2), block(128, 128, 1)],
        "layer3": [block(128, 256, 2), block(256, 256, 1)],
        "layer4": [block(256, 512, 2), block(512, 512, 1)],
    }


def prepare_params(raw):
    def prep_block(rb):
        return {"conv1": _prep_conv(rb["conv1"]),
                "conv2": _prep_conv(rb["conv2"]),
                "down": _prep_conv(rb["down"]) if rb["down"] is not None else None}
    out = {"conv1": _prep_conv(raw["conv1"])}
    for layer in ("layer1", "layer2", "layer3", "layer4"):
        out[layer] = [prep_block(rb) for rb in raw[layer]]
    return out


# ---------------------------------------------------------------------------
# Pure-JAX f32 reference (for validating the s2d remaps / pool / pipeline)
# ---------------------------------------------------------------------------
def _conv_bn_ref(x, rp, relu=True, residual=None):
    y = jax.lax.conv_general_dilated(
        x, rp["w"], window_strides=(rp["stride"], rp["stride"]),
        padding=((rp["pad"], rp["pad"]), (rp["pad"], rp["pad"])),
        dimension_numbers=("NHWC", "OIHW", "NHWC"))
    y = y * rp["scale"] + rp["bias"]
    if residual is not None:
        y = y + residual
    if relu:
        y = jnp.maximum(y, 0.0)
    return y


def _maxpool_ref(x):
    return jax.lax.reduce_window(x, -jnp.inf, jax.lax.max,
                                 (1, 3, 3, 1), (1, 2, 2, 1),
                                 ((0, 0), (1, 1), (1, 1), (0, 0)))


def resnet18_features_ref(raw, x_nchw):
    x = jnp.transpose(x_nchw, (0, 2, 3, 1)).astype(jnp.float32)
    x = _conv_bn_ref(x, raw["conv1"])
    x = _maxpool_ref(x)
    for layer in ("layer1", "layer2", "layer3", "layer4"):
        for rb in raw[layer]:
            identity = (x if rb["down"] is None
                        else _conv_bn_ref(x, rb["down"], relu=False))
            out = _conv_bn_ref(x, rb["conv1"], relu=True)
            x = _conv_bn_ref(out, rb["conv2"], relu=True, residual=identity)
    pooled = jnp.mean(x, axis=(1, 2))
    return pooled.reshape(x.shape[0], 512, 1, 1)


def _rel_err(a, b):
    a = jnp.asarray(a, jnp.float32)
    b = jnp.asarray(b, jnp.float32)
    return float(jnp.linalg.norm(a - b) / (jnp.linalg.norm(b) + 1e-6))


if __name__ == "__main__":
    root = jax.random.PRNGKey(0)
    kp, kx = jax.random.split(root)
    raw = init_raw_params(kp)
    params = prepare_params(raw)
    # Small input consistent with the module (NCHW image batch).
    x = jax.random.normal(kx, (2, 3, 64, 64), jnp.float32)

    # --- targeted correctness checks (s2d remaps, pool, residual path) ---
    x_nhwc = jnp.transpose(x, (0, 2, 3, 1)).astype(jnp.bfloat16)
    c1 = conv_bn(x_nhwc, params["conv1"])                      # 7x7 / s2
    c1_ref = _conv_bn_ref(x_nhwc.astype(jnp.float32), raw["conv1"])
    assert _rel_err(c1, c1_ref) < 5e-2, ("conv1 mismatch", _rel_err(c1, c1_ref))

    p1 = maxpool_3x3_s2(c1)                                    # 3x3 / s2 pool
    p1_ref = _maxpool_ref(c1.astype(jnp.float32))
    assert _rel_err(p1, p1_ref) < 1e-2, ("maxpool mismatch", _rel_err(p1, p1_ref))

    # layer2[0]: 3x3/s2 + 3x3/s1 + 1x1/s2 downsample + residual + relu
    b_out = _basic_block(p1, params["layer2"][0])
    rb = raw["layer2"][0]
    xf32 = p1.astype(jnp.float32)
    ident = _conv_bn_ref(xf32, rb["down"], relu=False)
    tmp = _conv_bn_ref(xf32, rb["conv1"], relu=True)
    b_ref = _conv_bn_ref(tmp, rb["conv2"], relu=True, residual=ident)
    assert _rel_err(b_out, b_ref) < 5e-2, ("block mismatch", _rel_err(b_out, b_ref))

    # --- full forward ---
    fwd = jax.jit(functools.partial(resnet18_features, params))
    feats = jax.block_until_ready(fwd(x))
    assert feats.shape == (2, 512, 1, 1), feats.shape
    assert feats.dtype == jnp.float32
    assert bool(jnp.all(jnp.isfinite(feats)))

    ref = jax.block_until_ready(
        jax.jit(functools.partial(resnet18_features_ref, raw))(x))
    e2e = _rel_err(feats, ref)
    assert e2e < 0.2, ("end-to-end mismatch (bf16 drift bound exceeded)", e2e)

    print("KERNEL_OK")
</pallas_src>

<mosaic_0001>
module attributes {stable_mosaic.version = 11 : i64} {
  func.func @_conv_kernel(%arg0: i32, %arg1: i32, %arg2: memref<1x1280x192xbf16, #tpu.memory_space<vmem>>, %arg3: memref<192x64xbf16, #tpu.memory_space<vmem>>, %arg4: memref<1x64xf32, #tpu.memory_space<vmem>>, %arg5: memref<1x1280x64xbf16, #tpu.memory_space<vmem>>) attributes {dimension_semantics = [#tpu.dimension_semantics<parallel>, #tpu.dimension_semantics<parallel>], iteration_bounds = array<i64: 1, 2>, scalar_prefetch = 0 : i64, scratch_operands = 0 : i64, tpu.core_type = #tpu.core_type<tc>, window_params = [{transform_indices = @transform_0, window_bounds = array<i64: 1, 1280, 192>}, {transform_indices = @transform_1, window_bounds = array<i64: 192, 64>}, {transform_indices = @transform_2, window_bounds = array<i64: 1, 64>}, {transform_indices = @transform_3, window_bounds = array<i64: 1, 1280, 64>}]} {
    %c0 = arith.constant 0 : index
    %c0_0 = arith.constant 0 : index
    %c0_1 = arith.constant 0 : index
    %0 = vector.load %arg2[%c0, %c0_0, %c0_1] : memref<1x1280x192xbf16, #tpu.memory_space<vmem>>, vector<1x1280x192xbf16>
    %1 = vector.shape_cast %0 : vector<1x1280x192xbf16> to vector<1280x192xbf16>
    %c0_2 = arith.constant 0 : index
    %c0_3 = arith.constant 0 : index
    %2 = vector.load %arg3[%c0_2, %c0_3] : memref<192x64xbf16, #tpu.memory_space<vmem>>, vector<192x64xbf16>
    %cst = arith.constant dense<0.000000e+00> : vector<1280x64xf32>
    %3 = tpu.matmul %1, %2, %cst {dimension_numbers = #tpu.dot_dimension_numbers<[1], [0], [0], [1], [0, 0, 1, 1], [], []>} : vector<1280x192xbf16>, vector<192x64xbf16>, vector<1280x64xf32> -> vector<1280x64xf32>
    %c0_4 = arith.constant 0 : index
    %c0_5 = arith.constant 0 : index
    %4 = vector.load %arg4[%c0_4, %c0_5] : memref<1x64xf32, #tpu.memory_space<vmem>>, vector<1x64xf32>
    %5 = vector.broadcast %4 : vector<1x64xf32> to vector<1280x64xf32>
    %6 = arith.addf %3, %5 : vector<1280x64xf32>
    %cst_6 = arith.constant 0.000000e+00 : f32
    %7 = vector.broadcast %cst_6 : f32 to vector<1280x64xf32>
    %8 = arith.maximumf %6, %7 : vector<1280x64xf32>
    %9 = arith.truncf %8 : vector<1280x64xf32> to vector<1280x64xbf16>
    %c0_7 = arith.constant 0 : index
    %c0_8 = arith.constant 0 : index
    %c0_9 = arith.constant 0 : index
    %10 = vector.load %arg5[%c0_7, %c0_8, %c0_9] : memref<1x1280x64xbf16, #tpu.memory_space<vmem>>, vector<1x1280x64xbf16>
    %11 = vector.shape_cast %10 : vector<1x1280x64xbf16> to vector<1280x64xbf16>
    %12 = vector.shape_cast %9 : vector<1280x64xbf16> to vector<1x1280x64xbf16>
    tpu.vector_store %arg5[%c0_7, %c0_8, %c0_9], %12 {strides = array<i32>} : memref<1x1280x64xbf16, #tpu.memory_space<vmem>>, vector<1x1280x64xbf16>,
    return
  }
  func.func @transform_0(%arg0: i32, %arg1: i32) -> (i32, i32, i32) {
    %c0_i32 = arith.constant 0 : i32
    %c0_i32_0 = arith.constant 0 : i32
    %c0_i32_1 = arith.constant 0 : i32
    return %arg1, %c0_i32, %c0_i32_0 : i32, i32, i32
  }
  func.func @transform_1(%arg0: i32, %arg1: i32) -> (i32, i32) {
    %c0_i32 = arith.constant 0 : i32
    %c0_i32_0 = arith.constant 0 : i32
    return %c0_i32, %arg0 : i32, i32
  }
  func.func @transform_2(%arg0: i32, %arg1: i32) -> (i32, i32) {
    %c0_i32 = arith.constant 0 : i32
    %c0_i32_0 = arith.constant 0 : i32
    return %c0_i32, %arg0 : i32, i32
  }
  func.func @transform_3(%arg0: i32, %arg1: i32) -> (i32, i32, i32) {
    %c0_i32 = arith.constant 0 : i32
    %c0_i32_0 = arith.constant 0 : i32
    return %arg1, %c0_i32, %arg0 : i32, i32, i32
  }
}

</mosaic_0001>

<bundles_post_ra>
// kernel: tpu_custom_call.1
= control target key start
LH: loop header
LB: loop body
LE: loop exit
PB: predicated region body
PF: predicated region fallthrough
CT: control target
= control target key end

     0   :  { %s4120_s12 = smov 0   ;;  %s4122_s13 = smov 0   ;;  %s4948_s0 = inlined_call_operand.vmem [shape: bf16[2,1280,192], index: 0, kind: input, shape index: {}]   ;;  %s4949_s1 = inlined_call_operand.vmem [shape: bf16[192,64], index: 1, kind: input, shape index: {}]   ;;  %s4950_s2 = inlined_call_operand.vmem [shape: f32[1,64], index: 2, kind: input, shape index: {}]   ;;  %s4951_s3 = inlined_call_operand.vmem [shape: bf16[2,1280,64], index: 3, kind: output, shape index: {}]  }
   0x1   :  { %s4124_s14 = smov 0  }
   0x2 LB: > { %s22_s15 = sadd.s32 1, %s4093_s13  ;;  %p3192_p0 = scmp.ge.s32.totalorder %s4097_s14, 1  ;;  %s4097_s14 = sphi %s4124_s14, %s13_s14   ;;  %s4093_s13 = sphi %s4122_s13, %s4953_s13   ;;  %s4089_s12 = sphi %s4120_s12, %s4952_s12  }
   0x3   : > { %p23_p1 = scmp.ge.s32.totalorder %s22_s15, 2  ;;  %p168_p2 = scmp.lt.s32.totalorder %s4097_s14, 3 }
   0x5   : > { %s4955_s15 = smov (%p23_p1, %s22_s15), 0  ;;  %p169_p3 = pnand %p3192_p0, %p168_p2 }
   0x6   : > { %v3821_v0 = vld [vmem:[%s4949_s1] sm:$0xff] (!%p169_p3)   ;;  %v4099_v1 = vmov (!%p169_p3), 0   ;;  %p202_p4 = scmp.lt.s32.totalorder (!%p169_p3), %s4089_s12, 1  ;;  %v3822_v2 = vld [vmem:[%s4949_s1 + $0x8] sm:$0xff] (!%p169_p3)   ;;  %v3823_v3 = vld [vmem:[%s4949_s1 + $0x10] sm:$0xff] (!%p169_p3)   ;;  %vm1206_vm0 = vcmask (!%p169_p3), 523264  }
   0x7   : > { %172 = sbr.rel (%p169_p3) target bundleno = 588 (0x24c), region = 32  ;;  %1447 = vmatprep.subr.bf16.mxu0 (!%p169_p3), %v4099_v1  ;;  %3770 = vmatprep.subr.bf16.mxu1 (!%p169_p3), %v4099_v1  ;;  %v3824_v4 = vld [vmem:[%s4949_s1 + $0x18] sm:$0xff] (!%p169_p3)   ;;  %v3825_v6 = vld [vmem:[%s4949_s1 + $0x20] sm:$0xff] (!%p169_p3)   ;;  %v3826_v8 = vld [vmem:[%s4949_s1 + $0x28] sm:$0xff] (!%p169_p3)   ;;  %vm2920_vm1 = vcmask (!%p169_p3), 519168  }
   0x8   : > { %1448 = vmatpush1.bf16.msra.mxu0 (!%p169_p3), %v3821_v0  ;;  %3782 = vmatpush1.bf16.msra.mxu1 (!%p169_p3), %v3821_v0  ;;  %v3827_v9 = vld [vmem:[%s4949_s1 + $0x30] sm:$0xff] (!%p169_p3)   ;;  %v3828_v10 = vld [vmem:[%s4949_s1 + $0x38] sm:$0xff] (!%p169_p3)   ;;  %v3829_v11 = vld [vmem:[%s4949_s1 + $0x40] sm:$0xff] (!%p169_p3)  }
   0x9   : > { %1449 = vmatprep.subr.bf16.mxu0 (!%p169_p3), %v4099_v1  ;;  %3771 = vmatprep.subr.bf16.mxu1 (!%p169_p3), %v4099_v1  ;;  %v3830_v12 = vld [vmem:[%s4949_s1 + $0x48] sm:$0xff] (!%p169_p3)   ;;  %v3831_v13 = vld [vmem:[%s4949_s1 + $0x50] sm:$0xff] (!%p169_p3)   ;;  %v3832_v14 = vld [vmem:[%s4949_s1 + $0x58] sm:$0xff] (!%p169_p3)  }
   0xc   : > { %1450 = vmatpush1.bf16.msra.mxu0 (!%p169_p3), %v3822_v2  ;;  %3783 = vmatpush1.bf16.msra.mxu1 (!%p169_p3), %v3822_v2 }
   0xd   : > { %1451 = vmatprep.subr.bf16.mxu0 (!%p169_p3), %v4099_v1  ;;  %3772 = vmatprep.subr.bf16.mxu1 (!%p169_p3), %v4099_v1 }
   0xe   : > { %s4957_s12 = smov (!%p202_p4, %s4089_s12), 1 }
   0xf   : > { %s3794_s22 = smul.u32 1280, %s4957_s12 }
  0x10   : > { %1452 = vmatpush1.bf16.msra.mxu0 %v3823_v3  ;;  %3784 = vmatpush1.bf16.msra.mxu1 %v3823_v3  ;;  %s3795_s23 = smul.u32 640, %s4957_s12 }
  0x11   : > { %s4162_s27 = scalar_lea.vmem %s4948_s0, %s3794_s22  ;;  %1453 = vmatprep.subr.bf16.mxu0 %v4099_v1  ;;  %3773 = vmatprep.subr.bf16.mxu1 %v4099_v1 }
  0x12   : > { %v3835_v5 = vld [vmem:[%s4162_s27 + $0x4] ss:$8 sps:$4 sm:$0xff]   ;;  %v3833_v15 = vld [vmem:[%s4162_s27] ss:$8 sps:$4 sm:$0xff]   ;;  %v3839_v17 = vld [vmem:[%s4162_s27 + $0x14] ss:$8 sps:$4 sm:$0xff]   ;;  %s4389_s25 = scalar_lea.vmem %s4951_s3, %s3795_s23 }
  0x13   : > { %v3838_v7 = vld [vmem:[%s4162_s27 + $0x284] ss:$8 sps:$4 sm:$0xff]   ;;  %3368 = vmatprep.mubr.msk.bf16.mxu0 %vm1206_vm0, %v3835_v5  ;;  %v3836_v16 = vld [vmem:[%s4162_s27 + $0x280] ss:$8 sps:$4 sm:$0xff]   ;;  %v3841_v18 = vld [vmem:[%s4162_s27 + $0x294] ss:$8 sps:$4 sm:$0xff]  }
  0x14   : > { %1454 = vmatpush1.bf16.msra.mxu0 %v3824_v4  ;;  %3785 = vmatpush1.bf16.msra.mxu1 %v3824_v4  ;;  %v3843_v19 = vld [vmem:[%s4162_s27 + $0x10] ss:$8 sps:$4 sm:$0xff]   ;;  %v3845_v21 = vld [vmem:[%s4162_s27 + $0x24] ss:$8 sps:$4 sm:$0xff]   ;;  %v3849_v23 = vld [vmem:[%s4162_s27 + $0x20] ss:$8 sps:$4 sm:$0xff]  }
  0x15   : > { %1455 = vmatprep.subr.bf16.mxu0 %v4099_v1  ;;  %3774 = vmatprep.subr.bf16.mxu1 %v4099_v1  ;;  %v3844_v20 = vld [vmem:[%s4162_s27 + $0x290] ss:$8 sps:$4 sm:$0xff]   ;;  %v3847_v22 = vld [vmem:[%s4162_s27 + $0x2a4] ss:$8 sps:$4 sm:$0xff]   ;;  %v3850_v24 = vld [vmem:[%s4162_s27 + $0x2a0] ss:$8 sps:$4 sm:$0xff]  }
  0x16   : > { %3408 = vmatprep.mubr.msk.bf16.mxu1 %vm1206_vm0, %v3838_v7  ;;  %v3851_v25 = vld [vmem:[%s4162_s27 + $0x34] ss:$8 sps:$4 sm:$0xff]   ;;  %v3855_v27 = vld [vmem:[%s4162_s27 + $0x30] ss:$8 sps:$4 sm:$0xff]   ;;  %v3857_v29 = vld [vmem:[%s4162_s27 + $0x44] ss:$8 sps:$4 sm:$0xff]  }
  0x17   : > { %v3853_v26 = vld [vmem:[%s4162_s27 + $0x2b4] ss:$8 sps:$4 sm:$0xff]   ;;  %v3856_v28 = vld [vmem:[%s4162_s27 + $0x2b0] ss:$8 sps:$4 sm:$0xff]   ;;  %v3859_v30 = vld [vmem:[%s4162_s27 + $0x2c4] ss:$8 sps:$4 sm:$0xff]  }
  0x18   : > { %1456 = vmatpush1.bf16.msra.mxu0 %v3825_v6  ;;  %3786 = vmatpush1.bf16.msra.mxu1 %v3825_v6  ;;  %v3861_v31 = vld [vmem:[%s4162_s27 + $0x40] ss:$8 sps:$4 sm:$0xff]   ;;  %v3863_v33 = vld [vmem:[%s4162_s27 + $0x54] ss:$8 sps:$4 sm:$0xff]   ;;  %v3867_v35 = vld [vmem:[%s4162_s27 + $0x50] ss:$8 sps:$4 sm:$0xff]  }
  0x19   : > { %1457 = vmatprep.subr.bf16.mxu0 %v4099_v1  ;;  %3775 = vmatprep.subr.bf16.mxu1 %v4099_v1  ;;  %v3862_v32 = vld [vmem:[%s4162_s27 + $0x2c0] ss:$8 sps:$4 sm:$0xff]   ;;  %v3865_v34 = vld [vmem:[%s4162_s27 + $0x2d4] ss:$8 sps:$4 sm:$0xff]   ;;  %v3868_v36 = vld [vmem:[%s4162_s27 + $0x2d0] ss:$8 sps:$4 sm:$0xff]  }
  0x1a   : > { %v3869_v37 = vld [vmem:[%s4162_s27 + $0x64] ss:$8 sps:$4 sm:$0xff]   ;;  %v3873_v39 = vld [vmem:[%s4162_s27 + $0x60] ss:$8 sps:$4 sm:$0xff]   ;;  %v3875_v41 = vld [vmem:[%s4162_s27 + $0x74] ss:$8 sps:$4 sm:$0xff]  }
  0x1b   : > { %v3871_v38 = vld [vmem:[%s4162_s27 + $0x2e4] ss:$8 sps:$4 sm:$0xff]   ;;  %v3874_v40 = vld [vmem:[%s4162_s27 + $0x2e0] ss:$8 sps:$4 sm:$0xff]   ;;  %v3877_v42 = vld [vmem:[%s4162_s27 + $0x2f4] ss:$8 sps:$4 sm:$0xff]  }
  0x1c   : > { %1458 = vmatpush1.bf16.msra.mxu0 %v3826_v8  ;;  %3787 = vmatpush1.bf16.msra.mxu1 %v3826_v8  ;;  %v3879_v43 = vld [vmem:[%s4162_s27 + $0x70] ss:$8 sps:$4 sm:$0xff]   ;;  %v3881_v45 = vld [vmem:[%s4162_s27 + $0x84] ss:$8 sps:$4 sm:$0xff]   ;;  %v3885_v47 = vld [vmem:[%s4162_s27 + $0x80] ss:$8 sps:$4 sm:$0xff]  }
  0x1d   : > { %1459 = vmatprep.subr.bf16.mxu0 %v4099_v1  ;;  %3776 = vmatprep.subr.bf16.mxu1 %v4099_v1  ;;  %v3880_v44 = vld [vmem:[%s4162_s27 + $0x2f0] ss:$8 sps:$4 sm:$0xff]   ;;  %v3883_v46 = vld [vmem:[%s4162_s27 + $0x304] ss:$8 sps:$4 sm:$0xff]   ;;  %v3886_v48 = vld [vmem:[%s4162_s27 + $0x300] ss:$8 sps:$4 sm:$0xff]  }
  0x1e   : > { %v3887_v49 = vld [vmem:[%s4162_s27 + $0x94] ss:$8 sps:$4 sm:$0xff]   ;;  %v3891_v51 = vld [vmem:[%s4162_s27 + $0x90] ss:$8 sps:$4 sm:$0xff]   ;;  %v3893_v53 = vld [vmem:[%s4162_s27 + $0xa4] ss:$8 sps:$4 sm:$0xff]  }
  0x1f   : > { %v3889_v50 = vld [vmem:[%s4162_s27 + $0x314] ss:$8 sps:$4 sm:$0xff]   ;;  %v3892_v52 = vld [vmem:[%s4162_s27 + $0x310] ss:$8 sps:$4 sm:$0xff]   ;;  %v3895_v54 = vld [vmem:[%s4162_s27 + $0x324] ss:$8 sps:$4 sm:$0xff]  }
  0x20   : > { %1460 = vmatpush1.bf16.msra.mxu0 %v3827_v9  ;;  %3788 = vmatpush1.bf16.msra.mxu1 %v3827_v9  ;;  %v3897_v55 = vld [vmem:[%s4162_s27 + $0xa0] ss:$8 sps:$4 sm:$0xff]   ;;  %v3899_v57 = vld [vmem:[%s4162_s27 + $0xb4] ss:$8 sps:$4 sm:$0xff]   ;;  %v3903_v59 = vld [vmem:[%s4162_s27 + $0xb0] ss:$8 sps:$4 sm:$0xff]  }
  0x21   : > { %1461 = vmatprep.subr.bf16.mxu0 %v4099_v1  ;;  %3777 = vmatprep.subr.bf16.mxu1 %v4099_v1  ;;  %v3898_v56 = vld [vmem:[%s4162_s27 + $0x320] ss:$8 sps:$4 sm:$0xff]   ;;  %v3901_v58 = vld [vmem:[%s4162_s27 + $0x334] ss:$8 sps:$4 sm:$0xff]   ;;  %v3904_v60 = vld [vmem:[%s4162_s27 + $0x330] ss:$8 sps:$4 sm:$0xff]  }
  0x22   : > { %v3905_v61 = vld [vmem:[%s4162_s27 + $0xc4] ss:$8 sps:$4 sm:$0xff]   ;;  %v3909_v63 = vld [vmem:[%s4162_s27 + $0xc0] ss:$8 sps:$4 sm:$0xff]   ;;  %v3913_v2 = vld [vmem:[%s4162_s27 + $0x354] ss:$8 sps:$4 sm:$0xff]  }
  0x23   : > { %v3907_v62 = vld [vmem:[%s4162_s27 + $0x344] ss:$8 sps:$4 sm:$0xff]   ;;  %v3910_v0 = vld [vmem:[%s4162_s27 + $0x340] ss:$8 sps:$4 sm:$0xff]   ;;  %v3915_v3 = vld [vmem:[%s4162_s27 + $0xd0] ss:$8 sps:$4 sm:$0xff]  }
  0x24   : > { %1462 = vmatpush1.bf16.msra.mxu0 %v3828_v10  ;;  %3789 = vmatpush1.bf16.msra.mxu1 %v3828_v10  ;;  %v3916_v4 = vld [vmem:[%s4162_s27 + $0x350] ss:$8 sps:$4 sm:$0xff]   ;;  %v3917_v5 = vld [vmem:[%s4162_s27 + $0xe4] ss:$8 sps:$4 sm:$0xff]   ;;  %v3921_v7 = vld [vmem:[%s4162_s27 + $0xe0] ss:$8 sps:$4 sm:$0xff]  }
  0x25   : > { %1463 = vmatprep.subr.bf16.mxu0 %v4099_v1  ;;  %3778 = vmatprep.subr.bf16.mxu1 %v4099_v1  ;;  %v3919_v6 = vld [vmem:[%s4162_s27 + $0x364] ss:$8 sps:$4 sm:$0xff]   ;;  %v3922_v8 = vld [vmem:[%s4162_s27 + $0x360] ss:$8 sps:$4 sm:$0xff]   ;;  %v3923_v9 = vld [vmem:[%s4162_s27 + $0xf4] ss:$8 sps:$4 sm:$0xff]  }
  0x26   : > { %v3925_v10 = vld [vmem:[%s4162_s27 + $0x374] ss:$8 sps:$4 sm:$0xff]  }
  0x28   : > { %1464 = vmatpush1.bf16.msra.mxu0 %v3829_v11  ;;  %3790 = vmatpush1.bf16.msra.mxu1 %v3829_v11  ;;  %v3927_v11 = vld [vmem:[%s4162_s27 + $0xf0] ss:$8 sps:$4 sm:$0xff]  }
  0x29   : > { %1465 = vmatprep.subr.bf16.mxu0 %v4099_v1  ;;  %3779 = vmatprep.subr.bf16.mxu1 %v4099_v1 }
  0x2c   : > { %1466 = vmatpush1.bf16.msra.mxu0 %v3830_v12  ;;  %3791 = vmatpush1.bf16.msra.mxu1 %v3830_v12  ;;  %v3928_v12 = vld [vmem:[%s4162_s27 + $0x370] ss:$8 sps:$4 sm:$0xff]  }
  0x2d   : > { %1467 = vmatprep.subr.bf16.mxu0 %v4099_v1  ;;  %3780 = vmatprep.subr.bf16.mxu1 %v4099_v1 }
  0x30   : > { %1468 = vmatpush1.bf16.msra.mxu0 %v3831_v13  ;;  %3792 = vmatpush1.bf16.msra.mxu1 %v3831_v13  ;;  %v3929_v13 = vld [vmem:[%s4162_s27 + $0x104] ss:$8 sps:$4 sm:$0xff]  }
  0x31   : > { %1469 = vmatprep.subr.bf16.mxu0 %v4099_v1  ;;  %3781 = vmatprep.subr.bf16.mxu1 %v4099_v1  ;;  %v3911_v1 = vld [vmem:[%s4162_s27 + $0xd4] ss:$8 sps:$4 sm:$0xff]  }
  0x34   : > { %1470 = vmatpush1.bf16.msra.mxu0 %v3832_v14  ;;  %3793 = vmatpush1.bf16.msra.mxu1 %v3832_v14  ;;  %v3931_v14 = vld [vmem:[%s4162_s27 + $0x384] ss:$8 sps:$4 sm:$0xff]  }
  0x37   : > { %1480 = vmatmul.mubr.bf16.vlgmr.msra.gmra.mrb[0].mxu0 %v3833_v15  ;;  %1800 = vmatmul.mubr.bf16.vlgmr.msra.gmra.mrb[0].mxu1 %v3836_v16  ;;  %v3933_v15 = vld [vmem:[%s4162_s27 + $0x100] ss:$8 sps:$4 sm:$0xff]  }
  0x38   : > { %3369 = vmatprep.mubr.msk.bf16.mxu0 %vm1206_vm0, %v3839_v17  ;;  %3409 = vmatprep.mubr.msk.bf16.mxu1 %vm1206_vm0, %v3841_v18  ;;  %v3934_v16 = vld [vmem:[%s4162_s27 + $0x380] ss:$8 sps:$4 sm:$0xff]   ;;  %v3935_v17 = vld [vmem:[%s4162_s27 + $0x114] ss:$8 sps:$4 sm:$0xff]  }
  0x39   : > { %v3937_v18 = vld [vmem:[%s4162_s27 + $0x394] ss:$8 sps:$4 sm:$0xff]  }
  0x3f   : > { %1488 = vmatmul.mubr.bf16.gmra.mrb[4].mxu0 %v3843_v19  ;;  %1808 = vmatmul.mubr.bf16.gmra.mrb[4].mxu1 %v3844_v20  ;;  %v3939_v19 = vld [vmem:[%s4162_s27 + $0x110] ss:$8 sps:$4 sm:$0xff]  }
  0x40   : > { %3370 = vmatprep.mubr.msk.bf16.mxu0 %vm1206_vm0, %v3845_v21  ;;  %3410 = vmatprep.mubr.msk.bf16.mxu1 %vm1206_vm0, %v3847_v22  ;;  %v3940_v20 = vld [vmem:[%s4162_s27 + $0x390] ss:$8 sps:$4 sm:$0xff]   ;;  %v3941_v21 = vld [vmem:[%s4162_s27 + $0x124] ss:$8 sps:$4 sm:$0xff]  }
  0x41   : > { %v3943_v22 = vld [vmem:[%s4162_s27 + $0x3a4] ss:$8 sps:$4 sm:$0xff]  }
  0x47   : > { %1496 = vmatmul.mubr.bf16.gmra.mrb[8].mxu0 %v3849_v23  ;;  %1816 = vmatmul.mubr.bf16.gmra.mrb[8].mxu1 %v3850_v24  ;;  %v3945_v23 = vld [vmem:[%s4162_s27 + $0x120] ss:$8 sps:$4 sm:$0xff]  }
  0x48   : > { %3371 = vmatprep.mubr.msk.bf16.mxu0 %vm1206_vm0, %v3851_v25  ;;  %3411 = vmatprep.mubr.msk.bf16.mxu1 %vm1206_vm0, %v3853_v26  ;;  %v3946_v24 = vld [vmem:[%s4162_s27 + $0x3a0] ss:$8 sps:$4 sm:$0xff]   ;;  %v3947_v25 = vld [vmem:[%s4162_s27 + $0x134] ss:$8 sps:$4 sm:$0xff]  }
  0x49   : > { %v3949_v26 = vld [vmem:[%s4162_s27 + $0x3b4] ss:$8 sps:$4 sm:$0xff]  }
  0x4f   : > { %1504 = vmatmul.mubr.bf16.gmra.mrb[12].mxu0 %v3855_v27  ;;  %1824 = vmatmul.mubr.bf16.gmra.mrb[12].mxu1 %v3856_v28  ;;  %v3951_v27 = vld [vmem:[%s4162_s27 + $0x130] ss:$8 sps:$4 sm:$0xff]  }
  0x50   : > { %3372 = vmatprep.mubr.msk.bf16.mxu0 %vm1206_vm0, %v3857_v29  ;;  %3412 = vmatprep.mubr.msk.bf16.mxu1 %vm1206_vm0, %v3859_v30  ;;  %v3952_v28 = vld [vmem:[%s4162_s27 + $0x3b0] ss:$8 sps:$4 sm:$0xff]   ;;  %v3953_v29 = vld [vmem:[%s4162_s27 + $0x144] ss:$8 sps:$4 sm:$0xff]  }
  0x51   : > { %v3955_v30 = vld [vmem:[%s4162_s27 + $0x3c4] ss:$8 sps:$4 sm:$0xff]  }
  0x57   : > { %1512 = vmatmul.mubr.bf16.gmra.mrb[16].mxu0 %v3861_v31  ;;  %1832 = vmatmul.mubr.bf16.gmra.mrb[16].mxu1 %v3862_v32  ;;  %v3957_v31 = vld [vmem:[%s4162_s27 + $0x140] ss:$8 sps:$4 sm:$0xff]  }
  0x58   : > { %3373 = vmatprep.mubr.msk.bf16.mxu0 %vm1206_vm0, %v3863_v33  ;;  %3413 = vmatprep.mubr.msk.bf16.mxu1 %vm1206_vm0, %v3865_v34  ;;  %v3958_v32 = vld [vmem:[%s4162_s27 + $0x3c0] ss:$8 sps:$4 sm:$0xff]   ;;  %v3959_v33 = vld [vmem:[%s4162_s27 + $0x154] ss:$8 sps:$4 sm:$0xff]  }
  0x59   : > { %v3961_v34 = vld [vmem:[%s4162_s27 + $0x3d4] ss:$8 sps:$4 sm:$0xff]  }
  0x5f   : > { %1520 = vmatmul.mubr.bf16.gmra.mrb[20].mxu0 %v3867_v35  ;;  %1840 = vmatmul.mubr.bf16.gmra.mrb[20].mxu1 %v3868_v36  ;;  %v3963_v35 = vld [vmem:[%s4162_s27 + $0x150] ss:$8 sps:$4 sm:$0xff]  }
  0x60   : > { %3374 = vmatprep.mubr.msk.bf16.mxu0 %vm1206_vm0, %v3869_v37  ;;  %3414 = vmatprep.mubr.msk.bf16.mxu1 %vm1206_vm0, %v3871_v38  ;;  %v3964_v36 = vld [vmem:[%s4162_s27 + $0x3d0] ss:$8 sps:$4 sm:$0xff]   ;;  %v3965_v37 = vld [vmem:[%s4162_s27 + $0x164] ss:$8 sps:$4 sm:$0xff]  }
  0x61   : > { %v3967_v38 = vld [vmem:[%s4162_s27 + $0x3e4] ss:$8 sps:$4 sm:$0xff]  }
  0x67   : > { %1528 = vmatmul.mubr.bf16.gmra.mrb[24].mxu0 %v3873_v39  ;;  %1848 = vmatmul.mubr.bf16.gmra.mrb[24].mxu1 %v3874_v40  ;;  %v3969_v39 = vld [vmem:[%s4162_s27 + $0x160] ss:$8 sps:$4 sm:$0xff]  }
  0x68   : > { %3375 = vmatprep.mubr.msk.bf16.mxu0 %vm1206_vm0, %v3875_v41  ;;  %3415 = vmatprep.mubr.msk.bf16.mxu1 %vm1206_vm0, %v3877_v42  ;;  %v3970_v40 = vld [vmem:[%s4162_s27 + $0x3e0] ss:$8 sps:$4 sm:$0xff]   ;;  %v3971_v41 = vld [vmem:[%s4162_s27 + $0x174] ss:$8 sps:$4 sm:$0xff]  }
  0x69   : > { %v3973_v42 = vld [vmem:[%s4162_s27 + $0x3f4] ss:$8 sps:$4 sm:$0xff]  }
  0x6f   : > { %1536 = vmatmul.mubr.bf16.gmra.mrb[28].mxu0 %v3879_v43  ;;  %1856 = vmatmul.mubr.bf16.gmra.mrb[28].mxu1 %v3880_v44  ;;  %v3975_v43 = vld [vmem:[%s4162_s27 + $0x170] ss:$8 sps:$4 sm:$0xff]  }
  0x70   : > { %3376 = vmatprep.mubr.msk.bf16.mxu0 %vm1206_vm0, %v3881_v45  ;;  %3416 = vmatprep.mubr.msk.bf16.mxu1 %vm1206_vm0, %v3883_v46  ;;  %v3976_v44 = vld [vmem:[%s4162_s27 + $0x3f0] ss:$8 sps:$4 sm:$0xff]   ;;  %v3977_v45 = vld [vmem:[%s4162_s27 + $0x184] ss:$8 sps:$4 sm:$0xff]  }
  0x71   : > { %v3979_v46 = vld [vmem:[%s4162_s27 + $0x404] ss:$8 sps:$4 sm:$0xff]  }
  0x77   : > { %1544 = vmatmul.mubr.bf16.gmra.mrb[32].mxu0 %v3885_v47  ;;  %1864 = vmatmul.mubr.bf16.gmra.mrb[32].mxu1 %v3886_v48  ;;  %v3981_v47 = vld [vmem:[%s4162_s27 + $0x180] ss:$8 sps:$4 sm:$0xff]  }
  0x78   : > { %3377 = vmatprep.mubr.msk.bf16.mxu0 %vm1206_vm0, %v3887_v49  ;;  %3417 = vmatprep.mubr.msk.bf16.mxu1 %vm1206_vm0, %v3889_v50  ;;  %v3982_v48 = vld [vmem:[%s4162_s27 + $0x400] ss:$8 sps:$4 sm:$0xff]   ;;  %v3983_v49 = vld [vmem:[%s4162_s27 + $0x194] ss:$8 sps:$4 sm:$0xff]  }
  0x79   : > { %v3985_v50 = vld [vmem:[%s4162_s27 + $0x414] ss:$8 sps:$4 sm:$0xff]  }
  0x7f   : > { %1552 = vmatmul.mubr.bf16.gmra.mrb[36].mxu0 %v3891_v51  ;;  %1872 = vmatmul.mubr.bf16.gmra.mrb[36].mxu1 %v3892_v52  ;;  %v3987_v51 = vld [vmem:[%s4162_s27 + $0x190] ss:$8 sps:$4 sm:$0xff]  }
  0x80   : > { %3378 = vmatprep.mubr.msk.bf16.mxu0 %vm1206_vm0, %v3893_v53  ;;  %3418 = vmatprep.mubr.msk.bf16.mxu1 %vm1206_vm0, %v3895_v54  ;;  %v3988_v52 = vld [vmem:[%s4162_s27 + $0x410] ss:$8 sps:$4 sm:$0xff]   ;;  %v3989_v53 = vld [vmem:[%s4162_s27 + $0x1a4] ss:$8 sps:$4 sm:$0xff]  }
  0x81   : > { %v3991_v54 = vld [vmem:[%s4162_s27 + $0x424] ss:$8 sps:$4 sm:$0xff]  }
  0x87   : > { %1560 = vmatmul.mubr.bf16.gmra.mrb[40].mxu0 %v3897_v55  ;;  %1880 = vmatmul.mubr.bf16.gmra.mrb[40].mxu1 %v3898_v56  ;;  %v3993_v55 = vld [vmem:[%s4162_s27 + $0x1a0] ss:$8 sps:$4 sm:$0xff]  }
  0x88   : > { %3379 = vmatprep.mubr.msk.bf16.mxu0 %vm1206_vm0, %v3899_v57  ;;  %3419 = vmatprep.mubr.msk.bf16.mxu1 %vm1206_vm0, %v3901_v58  ;;  %v3994_v56 = vld [vmem:[%s4162_s27 + $0x420] ss:$8 sps:$4 sm:$0xff]   ;;  %v3995_v57 = vld [vmem:[%s4162_s27 + $0x1b4] ss:$8 sps:$4 sm:$0xff]  }
  0x89   : > { %v3997_v58 = vld [vmem:[%s4162_s27 + $0x434] ss:$8 sps:$4 sm:$0xff]  }
  0x8f   : > { %1568 = vmatmul.mubr.bf16.gmra.mrb[44].mxu0 %v3903_v59  ;;  %1888 = vmatmul.mubr.bf16.gmra.mrb[44].mxu1 %v3904_v60  ;;  %v4373_v59 = vld [vmem:[%s4950_s2] ss:$0 sm:$0xff] }
  0x90   : > { %3380 = vmatprep.mubr.msk.bf16.mxu0 %vm1206_vm0, %v3905_v61  ;;  %3420 = vmatprep.mubr.msk.bf16.mxu1 %vm1206_vm0, %v3907_v62 }
  0x97   : > { %1576 = vmatmul.mubr.bf16.gmra.mrb[48].mxu0 %v3909_v63  ;;  %1896 = vmatmul.mubr.bf16.gmra.mrb[48].mxu1 %v3910_v0 }
  0x98   : > { %3381 = vmatprep.mubr.msk.bf16.mxu0 %vm1206_vm0, %v3911_v1  ;;  %3421 = vmatprep.mubr.msk.bf16.mxu1 %vm1206_vm0, %v3913_v2  ;;  %v3999_v2 = vld [vmem:[%s4162_s27 + $0x1b0] ss:$8 sps:$4 sm:$0xff]  }
  0x9f   : > { %1584 = vmatmul.mubr.bf16.gmra.mrb[52].mxu0 %v3915_v3  ;;  %1904 = vmatmul.mubr.bf16.gmra.mrb[52].mxu1 %v3916_v4  ;;  %v4000_v3 = vld [vmem:[%s4162_s27 + $0x430] ss:$8 sps:$4 sm:$0xff]  }
  0xa0   : > { %3382 = vmatprep.mubr.msk.bf16.mxu0 %vm1206_vm0, %v3917_v5  ;;  %3422 = vmatprep.mubr.msk.bf16.mxu1 %vm1206_vm0, %v3919_v6  ;;  %v4001_v6 = vld [vmem:[%s4162_s27 + $0x1c4] ss:$8 sps:$4 sm:$0xff]  }
  0xa7   : > { %1592 = vmatmul.mubr.bf16.gmra.mrb[56].mxu0 %v3921_v7  ;;  %1912 = vmatmul.mubr.bf16.gmra.mrb[56].mxu1 %v3922_v8  ;;  %v4003_v7 = vld [vmem:[%s4162_s27 + $0x444] ss:$8 sps:$4 sm:$0xff]  }
  0xa8   : > { %3383 = vmatprep.mubr.msk.bf16.mxu0 %vm1206_vm0, %v3923_v9  ;;  %3423 = vmatprep.mubr.msk.bf16.mxu1 %vm1206_vm0, %v3925_v10 }
  0xaf   : > { %1600 = vmatmul.mubr.bf16.gmra.mrb[60].mxu0 %v3927_v11  ;;  %1920 = vmatmul.mubr.bf16.gmra.mrb[60].mxu1 %v3928_v12 }
  0xb0   : > { %3384 = vmatprep.mubr.msk.bf16.mxu0 %vm1206_vm0, %v3929_v13  ;;  %3424 = vmatprep.mubr.msk.bf16.mxu1 %vm1206_vm0, %v3931_v14 }
  0xb7   : > { %1608 = vmatmul.mubr.bf16.gmra.mrb[64].mxu0 %v3933_v15  ;;  %1928 = vmatmul.mubr.bf16.gmra.mrb[64].mxu1 %v3934_v16 }
  0xb8   : > { %3385 = vmatprep.mubr.msk.bf16.mxu0 %vm1206_vm0, %v3935_v17  ;;  %3425 = vmatprep.mubr.msk.bf16.mxu1 %vm1206_vm0, %v3937_v18 }
  0xbf   : > { %1616 = vmatmul.mubr.bf16.gmra.mrb[68].mxu0 %v3939_v19  ;;  %1936 = vmatmul.mubr.bf16.gmra.mrb[68].mxu1 %v3940_v20 }
  0xc0   : > { %3386 = vmatprep.mubr.msk.bf16.mxu0 %vm1206_vm0, %v3941_v21  ;;  %3426 = vmatprep.mubr.msk.bf16.mxu1 %vm1206_vm0, %v3943_v22 }
  0xc7   : > { %1624 = vmatmul.mubr.bf16.gmra.mrb[72].mxu0 %v3945_v23  ;;  %1944 = vmatmul.mubr.bf16.gmra.mrb[72].mxu1 %v3946_v24 }
  0xc8   : > { %3387 = vmatprep.mubr.msk.bf16.mxu0 %vm1206_vm0, %v3947_v25  ;;  %3427 = vmatprep.mubr.msk.bf16.mxu1 %vm1206_vm0, %v3949_v26  ;;  %v4005_v26 = vld [vmem:[%s4162_s27 + $0x1c0] ss:$8 sps:$4 sm:$0xff]  }
  0xcf   : > { %1632 = vmatmul.mubr.bf16.gmra.mrb[76].mxu0 %v3951_v27  ;;  %1952 = vmatmul.mubr.bf16.gmra.mrb[76].mxu1 %v3952_v28  ;;  %v4006_v27 = vld [vmem:[%s4162_s27 + $0x440] ss:$8 sps:$4 sm:$0xff]  }
  0xd0   : > { %3388 = vmatprep.mubr.msk.bf16.mxu0 %vm1206_vm0, %v3953_v29  ;;  %3428 = vmatprep.mubr.msk.bf16.mxu1 %vm1206_vm0, %v3955_v30  ;;  %v4007_v30 = vld [vmem:[%s4162_s27 + $0x1d4] ss:$8 sps:$4 sm:$0xff]  }
  0xd7   : > { %1640 = vmatmul.mubr.bf16.gmra.mrb[80].mxu0 %v3957_v31  ;;  %1960 = vmatmul.mubr.bf16.gmra.mrb[80].mxu1 %v3958_v32  ;;  %v4009_v31 = vld [vmem:[%s4162_s27 + $0x454] ss:$8 sps:$4 sm:$0xff]  }
  0xd8   : > { %3389 = vmatprep.mubr.msk.bf16.mxu0 %vm1206_vm0, %v3959_v33  ;;  %3429 = vmatprep.mubr.msk.bf16.mxu1 %vm1206_vm0, %v3961_v34 }
  0xdf   : > { %1648 = vmatmul.mubr.bf16.gmra.mrb[84].mxu0 %v3963_v35  ;;  %1968 = vmatmul.mubr.bf16.gmra.mrb[84].mxu1 %v3964_v36 }
  0xe0   : > { %3390 = vmatprep.mubr.msk.bf16.mxu0 %vm1206_vm0, %v3965_v37  ;;  %3430 = vmatprep.mubr.msk.bf16.mxu1 %vm1206_vm0, %v3967_v38 }
  0xe7   : > { %1656 = vmatmul.mubr.bf16.gmra.mrb[88].mxu0 %v3969_v39  ;;  %1976 = vmatmul.mubr.bf16.gmra.mrb[88].mxu1 %v3970_v40 }
  0xe8   : > { %3391 = vmatprep.mubr.msk.bf16.mxu0 %vm1206_vm0, %v3971_v41  ;;  %3431 = vmatprep.mubr.msk.bf16.mxu1 %vm1206_vm0, %v3973_v42 }
  0xef   : > { %1664 = vmatmul.mubr.bf16.gmra.mrb[92].mxu0 %v3975_v43  ;;  %1984 = vmatmul.mubr.bf16.gmra.mrb[92].mxu1 %v3976_v44 }
  0xf0   : > { %3392 = vmatprep.mubr.msk.bf16.mxu0 %vm1206_vm0, %v3977_v45  ;;  %3432 = vmatprep.mubr.msk.bf16.mxu1 %vm1206_vm0, %v3979_v46 }
  0xf7   : > { %1672 = vmatmul.mubr.bf16.gmra.mrb[96].mxu0 %v3981_v47  ;;  %1992 = vmatmul.mubr.bf16.gmra.mrb[96].mxu1 %v3982_v48 }
  0xf8   : > { %3393 = vmatprep.mubr.msk.bf16.mxu0 %vm1206_vm0, %v3983_v49  ;;  %3433 = vmatprep.mubr.msk.bf16.mxu1 %vm1206_vm0, %v3985_v50  ;;  %v4011_v50 = vld [vmem:[%s4162_s27 + $0x1d0] ss:$8 sps:$4 sm:$0xff]  }
  0xff   : > { %1680 = vmatmul.mubr.bf16.gmra.mrb[100].mxu0 %v3987_v51  ;;  %2000 = vmatmul.mubr.bf16.gmra.mrb[100].mxu1 %v3988_v52  ;;  %v4012_v51 = vld [vmem:[%s4162_s27 + $0x450] ss:$8 sps:$4 sm:$0xff]  }
 0x100   : > { %3394 = vmatprep.mubr.msk.bf16.mxu0 %vm1206_vm0, %v3989_v53  ;;  %3434 = vmatprep.mubr.msk.bf16.mxu1 %vm1206_vm0, %v3991_v54  ;;  %v4013_v54 = vld [vmem:[%s4162_s27 + $0x1e4] ss:$8 sps:$4 sm:$0xff]  }
 0x107   : > { %1688 = vmatmul.mubr.bf16.gmra.mrb[104].mxu0 %v3993_v55  ;;  %2008 = vmatmul.mubr.bf16.gmra.mrb[104].mxu1 %v3994_v56  ;;  %v4015_v55 = vld [vmem:[%s4162_s27 + $0x464] ss:$8 sps:$4 sm:$0xff]  }
 0x108   : > { %3395 = vmatprep.mubr.msk.bf16.mxu0 %vm1206_vm0, %v3995_v57  ;;  %3435 = vmatprep.mubr.msk.bf16.mxu1 %vm1206_vm0, %v3997_v58 }
 0x10a   : > { %v1481_v60 = vpop.f32.mrb[0].mxu0  ;;  %v1801_v61 = vpop.f32.mrb[0].mxu1 }
 0x10b   : > { %v1482_v62 = vadd.f32 %v4373_v59, %v1481_v60  ;;  %v1802_v63 = vadd.f32 %v4373_v59, %v1801_v61  ;;  %v1483_v0 = vpop.f32.mrb[1].mxu0  ;;  %v1803_v1 = vpop.f32.mrb[1].mxu1 }
 0x10c   : > { %v1484_v4 = vpop.f32.mrb[2].mxu0  ;;  %v1804_v5 = vpop.f32.mrb[2].mxu1 }
 0x10d   : > { %v2120_v8 = vmax.f32 %v1482_v62, 0.0  ;;  %v2200_v9 = vmax.f32 %v1802_v63, 0.0  ;;  %v1485_v10 = vadd.f32 %v4373_v59, %v1484_v4  ;;  %v1805_v11 = vadd.f32 %v4373_v59, %v1804_v5  ;;  %v1486_v12 = vpop.f32.mrb[3].mxu0  ;;  %v1806_v13 = vpop.f32.mrb[3].mxu1 }
 0x10e   : > { %v4018_v12 = vld [vmem:[%s4162_s27 + $0x460] ss:$8 sps:$4 sm:$0xff]  }
 0x10f   : > { %v3610_v14 = vpack.c.bf16 %v2120_v8, %v2120_v8  ;;  %v3690_v15 = vpack.c.bf16 %v2200_v9, %v2200_v9  ;;  %v2121_v16 = vmax.f32 %v1485_v10, 0.0  ;;  %v2201_v17 = vmax.f32 %v1805_v11, 0.0  ;;  %1696 = vmatmul.mubr.bf16.gmra.mrb[108].mxu0 %v3999_v2  ;;  %2016 = vmatmul.mubr.bf16.gmra.mrb[108].mxu1 %v4000_v3  ;;  %v4017_v11 = vld [vmem:[%s4162_s27 + $0x1e0] ss:$8 sps:$4 sm:$0xff]  }
 0x110   : > { %3396 = vmatprep.mubr.msk.bf16.mxu0 %vm1206_vm0, %v4001_v6  ;;  %3436 = vmatprep.mubr.msk.bf16.mxu1 %vm1206_vm0, %v4003_v7 }
 0x111   : > { %2921 = vst.msk [vmem:[%s4389_s25] sm:$0xf] %vm2920_vm1, %v3610_v14  ;;  %3001 = vst.msk [vmem:[%s4389_s25 + $0x140] sm:$0xf] %vm2920_vm1, %v3690_v15  ;;  %v3611_v18 = vpack.c.bf16 %v2121_v16, %v2121_v16  ;;  %v3691_v19 = vpack.c.bf16 %v2201_v17, %v2201_v17  ;;  %v4019_v15 = vld [vmem:[%s4162_s27 + $0x1f4] ss:$8 sps:$4 sm:$0xff]  }
 0x112   : > { %v1489_v20 = vpop.f32.mrb[4].mxu0  ;;  %v1809_v21 = vpop.f32.mrb[4].mxu1  ;;  %v4021_v16 = vld [vmem:[%s4162_s27 + $0x474] ss:$8 sps:$4 sm:$0xff]  }
 0x113   : > { %2922 = vst.msk [vmem:[%s4389_s25 + $0x4] sm:$0xf] %vm2920_vm1, %v3611_v18  ;;  %3002 = vst.msk [vmem:[%s4389_s25 + $0x144] sm:$0xf] %vm2920_vm1, %v3691_v19  ;;  %v1490_v22 = vadd.f32 %v4373_v59, %v1489_v20  ;;  %v1810_v23 = vadd.f32 %v4373_v59, %v1809_v21  ;;  %v1491_v24 = vpop.f32.mrb[5].mxu0  ;;  %v1811_v25 = vpop.f32.mrb[5].mxu1 }
 0x114   : > { %v1492_v28 = vpop.f32.mrb[6].mxu0  ;;  %v1812_v29 = vpop.f32.mrb[6].mxu1 }
 0x115   : > { %v2122_v32 = vmax.f32 %v1490_v22, 0.0  ;;  %v2202_v33 = vmax.f32 %v1810_v23, 0.0  ;;  %v1493_v34 = vadd.f32 %v4373_v59, %v1492_v28  ;;  %v1813_v35 = vadd.f32 %v4373_v59, %v1812_v29  ;;  %v1494_v36 = vpop.f32.mrb[7].mxu0  ;;  %v1814_v37 = vpop.f32.mrb[7].mxu1 }
 0x116   : > { %v4024_v36 = vld [vmem:[%s4162_s27 + $0x470] ss:$8 sps:$4 sm:$0xff]  }
 0x117   : > { %v3612_v38 = vpack.c.bf16 %v2122_v32, %v2122_v32  ;;  %v3692_v39 = vpack.c.bf16 %v2202_v33, %v2202_v33  ;;  %v2123_v40 = vmax.f32 %v1493_v34, 0.0  ;;  %v2203_v41 = vmax.f32 %v1813_v35, 0.0  ;;  %1704 = vmatmul.mubr.bf16.gmra.mrb[112].mxu0 %v4005_v26  ;;  %2024 = vmatmul.mubr.bf16.gmra.mrb[112].mxu1 %v4006_v27  ;;  %v4023_v35 = vld [vmem:[%s4162_s27 + $0x1f0] ss:$8 sps:$4 sm:$0xff]  }
 0x118   : > { %3397 = vmatprep.mubr.msk.bf16.mxu0 %vm1206_vm0, %v4007_v30  ;;  %3437 = vmatprep.mubr.msk.bf16.mxu1 %vm1206_vm0, %v4009_v31 }
 0x119   : > { %2923 = vst.msk [vmem:[%s4389_s25 + $0x8] sm:$0xf] %vm2920_vm1, %v3612_v38  ;;  %3003 = vst.msk [vmem:[%s4389_s25 + $0x148] sm:$0xf] %vm2920_vm1, %v3692_v39  ;;  %v3613_v42 = vpack.c.bf16 %v2123_v40, %v2123_v40  ;;  %v3693_v43 = vpack.c.bf16 %v2203_v41, %v2203_v41  ;;  %v4025_v39 = vld [vmem:[%s4162_s27 + $0x204] ss:$8 sps:$4 sm:$0xff]  }
 0x11a   : > { %v1497_v44 = vpop.f32.mrb[8].mxu0  ;;  %v1817_v45 = vpop.f32.mrb[8].mxu1  ;;  %v4027_v40 = vld [vmem:[%s4162_s27 + $0x484] ss:$8 sps:$4 sm:$0xff]  }
 0x11b   : > { %2924 = vst.msk [vmem:[%s4389_s25 + $0xc] sm:$0xf] %vm2920_vm1, %v3613_v42  ;;  %3004 = vst.msk [vmem:[%s4389_s25 + $0x14c] sm:$0xf] %vm2920_vm1, %v3693_v43  ;;  %v1498_v46 = vadd.f32 %v4373_v59, %v1497_v44  ;;  %v1818_v47 = vadd.f32 %v4373_v59, %v1817_v45  ;;  %v1499_v48 = vpop.f32.mrb[9].mxu0  ;;  %v1819_v49 = vpop.f32.mrb[9].mxu1 }
 0x11c   : > { %v1500_v52 = vpop.f32.mrb[10].mxu0  ;;  %v1820_v53 = vpop.f32.mrb[10].mxu1 }
 0x11d   : > { %v2124_v56 = vmax.f32 %v1498_v46, 0.0  ;;  %v2204_v57 = vmax.f32 %v1818_v47, 0.0  ;;  %v1501_v58 = vadd.f32 %v4373_v59, %v1500_v52  ;;  %v1821_v60 = vadd.f32 %v4373_v59, %v1820_v53  ;;  %v1502_v61 = vpop.f32.mrb[11].mxu0  ;;  %v1822_v62 = vpop.f32.mrb[11].mxu1 }
 0x11e   : > { %v4030_v61 = vld [vmem:[%s4162_s27 + $0x480] ss:$8 sps:$4 sm:$0xff]  }
 0x11f   : > { %v3614_v63 = vpack.c.bf16 %v2124_v56, %v2124_v56  ;;  %v3694_v0 = vpack.c.bf16 %v2204_v57, %v2204_v57  ;;  %v2125_v1 = vmax.f32 %v1501_v58, 0.0  ;;  %v2205_v2 = vmax.f32 %v1821_v60, 0.0  ;;  %1712 = vmatmul.mubr.bf16.gmra.mrb[116].mxu0 %v4011_v50  ;;  %2032 = vmatmul.mubr.bf16.gmra.mrb[116].mxu1 %v4012_v51  ;;  %v4029_v60 = vld [vmem:[%s4162_s27 + $0x200] ss:$8 sps:$4 sm:$0xff]  }
 0x120   : > { %3398 = vmatprep.mubr.msk.bf16.mxu0 %vm1206_vm0, %v4013_v54  ;;  %3438 = vmatprep.mubr.msk.bf16.mxu1 %vm1206_vm0, %v4015_v55 }
 0x121   : > { %2925 = vst.msk [vmem:[%s4389_s25 + $0x10] sm:$0xf] %vm2920_vm1, %v3614_v63  ;;  %3005 = vst.msk [vmem:[%s4389_s25 + $0x150] sm:$0xf] %vm2920_vm1, %v3694_v0  ;;  %v3615_v3 = vpack.c.bf16 %v2125_v1, %v2125_v1  ;;  %v3695_v4 = vpack.c.bf16 %v2205_v2, %v2205_v2  ;;  %v4031_v0 = vld [vmem:[%s4162_s27 + $0x214] ss:$8 sps:$4 sm:$0xff]  }
 0x122   : > { %v1505_v5 = vpop.f32.mrb[12].mxu0  ;;  %v1825_v6 = vpop.f32.mrb[12].mxu1  ;;  %v4033_v1 = vld [vmem:[%s4162_s27 + $0x494] ss:$8 sps:$4 sm:$0xff]  }
 0x123   : > { %2926 = vst.msk [vmem:[%s4389_s25 + $0x14] sm:$0xf] %vm2920_vm1, %v3615_v3  ;;  %3006 = vst.msk [vmem:[%s4389_s25 + $0x154] sm:$0xf] %vm2920_vm1, %v3695_v4  ;;  %v1506_v7 = vadd.f32 %v4373_v59, %v1505_v5  ;;  %v1826_v8 = vadd.f32 %v4373_v59, %v1825_v6  ;;  %v1507_v9 = vpop.f32.mrb[13].mxu0  ;;  %v1827_v10 = vpop.f32.mrb[13].mxu1 }
 0x124   : > { %v1508_v13 = vpop.f32.mrb[14].mxu0  ;;  %v1828_v14 = vpop.f32.mrb[14].mxu1 }
 0x125   : > { %v2126_v17 = vmax.f32 %v1506_v7, 0.0  ;;  %v2206_v18 = vmax.f32 %v1826_v8, 0.0  ;;  %v1509_v19 = vadd.f32 %v4373_v59, %v1508_v13  ;;  %v1829_v20 = vadd.f32 %v4373_v59, %v1828_v14  ;;  %v1510_v21 = vpop.f32.mrb[15].mxu0  ;;  %v1830_v22 = vpop.f32.mrb[15].mxu1 }
 0x126   : > { %v4036_v21 = vld [vmem:[%s4162_s27 + $0x490] ss:$8 sps:$4 sm:$0xff]  }
 0x127   : > { %v3616_v23 = vpack.c.bf16 %v2126_v17, %v2126_v17  ;;  %v3696_v24 = vpack.c.bf16 %v2206_v18, %v2206_v18  ;;  %v2127_v25 = vmax.f32 %v1509_v19, 0.0  ;;  %v2207_v26 = vmax.f32 %v1829_v20, 0.0  ;;  %1720 = vmatmul.mubr.bf16.gmra.mrb[120].mxu0 %v4017_v11  ;;  %2040 = vmatmul.mubr.bf16.gmra.mrb[120].mxu1 %v4018_v12  ;;  %v4035_v20 = vld [vmem:[%s4162_s27 + $0x210] ss:$8 sps:$4 sm:$0xff]  }
 0x128   : > { %3399 = vmatprep.mubr.msk.bf16.mxu0 %vm1206_vm0, %v4019_v15  ;;  %3439 = vmatprep.mubr.msk.bf16.mxu1 %vm1206_vm0, %v4021_v16 }
 0x129   : > { %2927 = vst.msk [vmem:[%s4389_s25 + $0x18] sm:$0xf] %vm2920_vm1, %v3616_v23  ;;  %3007 = vst.msk [vmem:[%s4389_s25 + $0x158] sm:$0xf] %vm2920_vm1, %v3696_v24  ;;  %v3617_v27 = vpack.c.bf16 %v2127_v25, %v2127_v25  ;;  %v3697_v28 = vpack.c.bf16 %v2207_v26, %v2207_v26  ;;  %v4037_v24 = vld [vmem:[%s4162_s27 + $0x224] ss:$8 sps:$4 sm:$0xff]  }
 0x12a   : > { %v1513_v29 = vpop.f32.mrb[16].mxu0  ;;  %v1833_v30 = vpop.f32.mrb[16].mxu1  ;;  %v4039_v25 = vld [vmem:[%s4162_s27 + $0x4a4] ss:$8 sps:$4 sm:$0xff]  }
 0x12b   : > { %2928 = vst.msk [vmem:[%s4389_s25 + $0x1c] sm:$0xf] %vm2920_vm1, %v3617_v27  ;;  %3008 = vst.msk [vmem:[%s4389_s25 + $0x15c] sm:$0xf] %vm2920_vm1, %v3697_v28  ;;  %v1514_v31 = vadd.f32 %v4373_v59, %v1513_v29  ;;  %v1834_v32 = vadd.f32 %v4373_v59, %v1833_v30  ;;  %v1515_v33 = vpop.f32.mrb[17].mxu0  ;;  %v1835_v34 = vpop.f32.mrb[17].mxu1 }
 0x12c   : > { %v1516_v37 = vpop.f32.mrb[18].mxu0  ;;  %v1836_v38 = vpop.f32.mrb[18].mxu1 }
 0x12d   : > { %v2128_v41 = vmax.f32 %v1514_v31, 0.0  ;;  %v2208_v42 = vmax.f32 %v1834_v32, 0.0  ;;  %v1517_v43 = vadd.f32 %v4373_v59, %v1516_v37  ;;  %v1837_v44 = vadd.f32 %v4373_v59, %v1836_v38  ;;  %v1518_v45 = vpop.f32.mrb[19].mxu0  ;;  %v1838_v46 = vpop.f32.mrb[19].mxu1 }
 0x12e   : > { %v4042_v45 = vld [vmem:[%s4162_s27 + $0x4a0] ss:$8 sps:$4 sm:$0xff]  }
 0x12f   : > { %v3618_v47 = vpack.c.bf16 %v2128_v41, %v2128_v41  ;;  %v3698_v48 = vpack.c.bf16 %v2208_v42, %v2208_v42  ;;  %v2129_v49 = vmax.f32 %v1517_v43, 0.0  ;;  %v2209_v50 = vmax.f32 %v1837_v44, 0.0  ;;  %1728 = vmatmul.mubr.bf16.gmra.mrb[124].mxu0 %v4023_v35  ;;  %2048 = vmatmul.mubr.bf16.gmra.mrb[124].mxu1 %v4024_v36  ;;  %v4041_v44 = vld [vmem:[%s4162_s27 + $0x220] ss:$8 sps:$4 sm:$0xff]  }
 0x130   : > { %3400 = vmatprep.mubr.msk.bf16.mxu0 %vm1206_vm0, %v4025_v39  ;;  %3440 = vmatprep.mubr.msk.bf16.mxu1 %vm1206_vm0, %v4027_v40 }
 0x131   : > { %2929 = vst.msk [vmem:[%s4389_s25 + $0x20] sm:$0xf] %vm2920_vm1, %v3618_v47  ;;  %3009 = vst.msk [vmem:[%s4389_s25 + $0x160] sm:$0xf] %vm2920_vm1, %v3698_v48  ;;  %v3619_v51 = vpack.c.bf16 %v2129_v49, %v2129_v49  ;;  %v3699_v52 = vpack.c.bf16 %v2209_v50, %v2209_v50  ;;  %v4043_v48 = vld [vmem:[%s4162_s27 + $0x234] ss:$8 sps:$4 sm:$0xff]  }
 0x132   : > { %v1521_v53 = vpop.f32.mrb[20].mxu0  ;;  %v1841_v54 = vpop.f32.mrb[20].mxu1  ;;  %v4045_v49 = vld [vmem:[%s4162_s27 + $0x4b4] ss:$8 sps:$4 sm:$0xff]  }
 0x133   : > { %2930 = vst.msk [vmem:[%s4389_s25 + $0x24] sm:$0xf] %vm2920_vm1, %v3619_v51  ;;  %3010 = vst.msk [vmem:[%s4389_s25 + $0x164] sm:$0xf] %vm2920_vm1, %v3699_v52  ;;  %v1522_v55 = vadd.f32 %v4373_v59, %v1521_v53  ;;  %v1842_v56 = vadd.f32 %v4373_v59, %v1841_v54  ;;  %v1523_v57 = vpop.f32.mrb[21].mxu0  ;;  %v1843_v58 = vpop.f32.mrb[21].mxu1 }
 0x134   : > { %v1524_v62 = vpop.f32.mrb[22].mxu0  ;;  %v1844_v63 = vpop.f32.mrb[22].mxu1 }
 0x135   : > { %v2130_v2 = vmax.f32 %v1522_v55, 0.0  ;;  %v2210_v3 = vmax.f32 %v1842_v56, 0.0  ;;  %v1525_v4 = vadd.f32 %v4373_v59, %v1524_v62  ;;  %v1845_v5 = vadd.f32 %v4373_v59, %v1844_v63  ;;  %v1526_v6 = vpop.f32.mrb[23].mxu0  ;;  %v1846_v7 = vpop.f32.mrb[23].mxu1 }
 0x136   : > { %v4048_v6 = vld [vmem:[%s4162_s27 + $0x4b0] ss:$8 sps:$4 sm:$0xff]  }
 0x137   : > { %v3620_v8 = vpack.c.bf16 %v2130_v2, %v2130_v2  ;;  %v3700_v9 = vpack.c.bf16 %v2210_v3, %v2210_v3  ;;  %v2131_v10 = vmax.f32 %v1525_v4, 0.0  ;;  %v2211_v11 = vmax.f32 %v1845_v5, 0.0  ;;  %1736 = vmatmul.mubr.bf16.gmra.mrb[128].mxu0 %v4029_v60  ;;  %2056 = vmatmul.mubr.bf16.gmra.mrb[128].mxu1 %v4030_v61  ;;  %v4047_v5 = vld [vmem:[%s4162_s27 + $0x230] ss:$8 sps:$4 sm:$0xff]  }
 0x138   : > { %3401 = vmatprep.mubr.msk.bf16.mxu0 %vm1206_vm0, %v4031_v0  ;;  %3441 = vmatprep.mubr.msk.bf16.mxu1 %vm1206_vm0, %v4033_v1 }
 0x139   : > { %2931 = vst.msk [vmem:[%s4389_s25 + $0x28] sm:$0xf] %vm2920_vm1, %v3620_v8  ;;  %3011 = vst.msk [vmem:[%s4389_s25 + $0x168] sm:$0xf] %vm2920_vm1, %v3700_v9  ;;  %v3621_v12 = vpack.c.bf16 %v2131_v10, %v2131_v10  ;;  %v3701_v13 = vpack.c.bf16 %v2211_v11, %v2211_v11  ;;  %v4049_v9 = vld [vmem:[%s4162_s27 + $0x244] ss:$8 sps:$4 sm:$0xff]  }
 0x13a   : > { %v1529_v14 = vpop.f32.mrb[24].mxu0  ;;  %v1849_v15 = vpop.f32.mrb[24].mxu1  ;;  %v4051_v10 = vld [vmem:[%s4162_s27 + $0x4c4] ss:$8 sps:$4 sm:$0xff]  }
 0x13b   : > { %2932 = vst.msk [vmem:[%s4389_s25 + $0x2c] sm:$0xf] %vm2920_vm1, %v3621_v12  ;;  %3012 = vst.msk [vmem:[%s4389_s25 + $0x16c] sm:$0xf] %vm2920_vm1, %v3701_v13  ;;  %v1530_v16 = vadd.f32 %v4373_v59, %v1529_v14  ;;  %v1850_v17 = vadd.f32 %v4373_v59, %v1849_v15  ;;  %v1531_v18 = vpop.f32.mrb[25].mxu0  ;;  %v1851_v19 = vpop.f32.mrb[25].mxu1 }
 0x13c   : > { %v1532_v22 = vpop.f32.mrb[26].mxu0  ;;  %v1852_v23 = vpop.f32.mrb[26].mxu1 }
 0x13d   : > { %v2132_v26 = vmax.f32 %v1530_v16, 0.0  ;;  %v2212_v27 = vmax.f32 %v1850_v17, 0.0  ;;  %v1533_v28 = vadd.f32 %v4373_v59, %v1532_v22  ;;  %v1853_v29 = vadd.f32 %v4373_v59, %v1852_v23  ;;  %v1534_v30 = vpop.f32.mrb[27].mxu0  ;;  %v1854_v31 = vpop.f32.mrb[27].mxu1 }
 0x13e   : > { %v4054_v30 = vld [vmem:[%s4162_s27 + $0x4c0] ss:$8 sps:$4 sm:$0xff]  }
 0x13f   : > { %v3622_v32 = vpack.c.bf16 %v2132_v26, %v2132_v26  ;;  %v3702_v33 = vpack.c.bf16 %v2212_v27, %v2212_v27  ;;  %v2133_v34 = vmax.f32 %v1533_v28, 0.0  ;;  %v2213_v35 = vmax.f32 %v1853_v29, 0.0  ;;  %1744 = vmatmul.mubr.bf16.gmra.mrb[132].mxu0 %v4035_v20  ;;  %2064 = vmatmul.mubr.bf16.gmra.mrb[132].mxu1 %v4036_v21  ;;  %v4053_v29 = vld [vmem:[%s4162_s27 + $0x240] ss:$8 sps:$4 sm:$0xff]  }
 0x140   : > { %3402 = vmatprep.mubr.msk.bf16.mxu0 %vm1206_vm0, %v4037_v24  ;;  %3442 = vmatprep.mubr.msk.bf16.mxu1 %vm1206_vm0, %v4039_v25 }
 0x141   : > { %2933 = vst.msk [vmem:[%s4389_s25 + $0x30] sm:$0xf] %vm2920_vm1, %v3622_v32  ;;  %3013 = vst.msk [vmem:[%s4389_s25 + $0x170] sm:$0xf] %vm2920_vm1, %v3702_v33  ;;  %v3623_v36 = vpack.c.bf16 %v2133_v34, %v2133_v34  ;;  %v3703_v37 = vpack.c.bf16 %v2213_v35, %v2213_v35  ;;  %v4055_v33 = vld [vmem:[%s4162_s27 + $0x254] ss:$8 sps:$4 sm:$0xff]  }
 0x142   : > { %v1537_v38 = vpop.f32.mrb[28].mxu0  ;;  %v1857_v39 = vpop.f32.mrb[28].mxu1  ;;  %v4057_v34 = vld [vmem:[%s4162_s27 + $0x4d4] ss:$8 sps:$4 sm:$0xff]  }
 0x143   : > { %2934 = vst.msk [vmem:[%s4389_s25 + $0x34] sm:$0xf] %vm2920_vm1, %v3623_v36  ;;  %3014 = vst.msk [vmem:[%s4389_s25 + $0x174] sm:$0xf] %vm2920_vm1, %v3703_v37  ;;  %v1538_v40 = vadd.f32 %v4373_v59, %v1537_v38  ;;  %v1858_v41 = vadd.f32 %v4373_v59, %v1857_v39  ;;  %v1539_v42 = vpop.f32.mrb[29].mxu0  ;;  %v1859_v43 = vpop.f32.mrb[29].mxu1 }
 0x144   : > { %v1540_v46 = vpop.f32.mrb[30].mxu0  ;;  %v1860_v47 = vpop.f32.mrb[30].mxu1 }
 0x145   : > { %v2134_v50 = vmax.f32 %v1538_v40, 0.0  ;;  %v2214_v51 = vmax.f32 %v1858_v41, 0.0  ;;  %v1541_v52 = vadd.f32 %v4373_v59, %v1540_v46  ;;  %v1861_v53 = vadd.f32 %v4373_v59, %v1860_v47  ;;  %v1542_v54 = vpop.f32.mrb[31].mxu0  ;;  %v1862_v55 = vpop.f32.mrb[31].mxu1 }
 0x146   : > { %v4060_v54 = vld [vmem:[%s4162_s27 + $0x4d0] ss:$8 sps:$4 sm:$0xff]  }
 0x147   : > { %v3624_v56 = vpack.c.bf16 %v2134_v50, %v2134_v50  ;;  %v3704_v57 = vpack.c.bf16 %v2214_v51, %v2214_v51  ;;  %v2135_v58 = vmax.f32 %v1541_v52, 0.0  ;;  %v2215_v60 = vmax.f32 %v1861_v53, 0.0  ;;  %1752 = vmatmul.mubr.bf16.gmra.mrb[136].mxu0 %v4041_v44  ;;  %2072 = vmatmul.mubr.bf16.gmra.mrb[136].mxu1 %v4042_v45  ;;  %v4059_v53 = vld [vmem:[%s4162_s27 + $0x250] ss:$8 sps:$4 sm:$0xff]  }
 0x148   : > { %3403 = vmatprep.mubr.msk.bf16.mxu0 %vm1206_vm0, %v4043_v48  ;;  %3443 = vmatprep.mubr.msk.bf16.mxu1 %vm1206_vm0, %v4045_v49 }
 0x149   : > { %2935 = vst.msk [vmem:[%s4389_s25 + $0x38] sm:$0xf] %vm2920_vm1, %v3624_v56  ;;  %3015 = vst.msk [vmem:[%s4389_s25 + $0x178] sm:$0xf] %vm2920_vm1, %v3704_v57  ;;  %v3625_v61 = vpack.c.bf16 %v2135_v58, %v2135_v58  ;;  %v3705_v62 = vpack.c.bf16 %v2215_v60, %v2215_v60  ;;  %v4061_v57 = vld [vmem:[%s4162_s27 + $0x264] ss:$8 sps:$4 sm:$0xff]  }
 0x14a   : > { %v1545_v63 = vpop.f32.mrb[32].mxu0  ;;  %v1865_v0 = vpop.f32.mrb[32].mxu1  ;;  %v4063_v58 = vld [vmem:[%s4162_s27 + $0x4e4] ss:$8 sps:$4 sm:$0xff]  }
 0x14b   : > { %2936 = vst.msk [vmem:[%s4389_s25 + $0x3c] sm:$0xf] %vm2920_vm1, %v3625_v61  ;;  %3016 = vst.msk [vmem:[%s4389_s25 + $0x17c] sm:$0xf] %vm2920_vm1, %v3705_v62  ;;  %v1546_v1 = vadd.f32 %v4373_v59, %v1545_v63  ;;  %v1866_v2 = vadd.f32 %v4373_v59, %v1865_v0  ;;  %v1547_v3 = vpop.f32.mrb[33].mxu0  ;;  %v1867_v4 = vpop.f32.mrb[33].mxu1 }
 0x14c   : > { %v1548_v7 = vpop.f32.mrb[34].mxu0  ;;  %v1868_v8 = vpop.f32.mrb[34].mxu1 }
 0x14d   : > { %v2136_v11 = vmax.f32 %v1546_v1, 0.0  ;;  %v2216_v12 = vmax.f32 %v1866_v2, 0.0  ;;  %v1549_v13 = vadd.f32 %v4373_v59, %v1548_v7  ;;  %v1869_v14 = vadd.f32 %v4373_v59, %v1868_v8  ;;  %v1550_v15 = vpop.f32.mrb[35].mxu0  ;;  %v1870_v16 = vpop.f32.mrb[35].mxu1 }
 0x14e   : > { %v4066_v15 = vld [vmem:[%s4162_s27 + $0x4e0] ss:$8 sps:$4 sm:$0xff]  }
 0x14f   : > { %v3626_v17 = vpack.c.bf16 %v2136_v11, %v2136_v11  ;;  %v3706_v18 = vpack.c.bf16 %v2216_v12, %v2216_v12  ;;  %v2137_v19 = vmax.f32 %v1549_v13, 0.0  ;;  %v2217_v20 = vmax.f32 %v1869_v14, 0.0  ;;  %1760 = vmatmul.mubr.bf16.gmra.mrb[140].mxu0 %v4047_v5  ;;  %2080 = vmatmul.mubr.bf16.gmra.mrb[140].mxu1 %v4048_v6  ;;  %v4065_v14 = vld [vmem:[%s4162_s27 + $0x260] ss:$8 sps:$4 sm:$0xff]  }
 0x150   : > { %3404 = vmatprep.mubr.msk.bf16.mxu0 %vm1206_vm0, %v4049_v9  ;;  %3444 = vmatprep.mubr.msk.bf16.mxu1 %vm1206_vm0, %v4051_v10 }
 0x151   : > { %2937 = vst.msk [vmem:[%s4389_s25 + $0x40] sm:$0xf] %vm2920_vm1, %v3626_v17  ;;  %3017 = vst.msk [vmem:[%s4389_s25 + $0x180] sm:$0xf] %vm2920_vm1, %v3706_v18  ;;  %v3627_v21 = vpack.c.bf16 %v2137_v19, %v2137_v19  ;;  %v3707_v22 = vpack.c.bf16 %v2217_v20, %v2217_v20  ;;  %v4067_v18 = vld [vmem:[%s4162_s27 + $0x274] ss:$8 sps:$4 sm:$0xff]  }
 0x152   : > { %v1553_v23 = vpop.f32.mrb[36].mxu0  ;;  %v1873_v24 = vpop.f32.mrb[36].mxu1  ;;  %v4069_v19 = vld [vmem:[%s4162_s27 + $0x4f4] ss:$8 sps:$4 sm:$0xff]  }
 0x153   : > { %2938 = vst.msk [vmem:[%s4389_s25 + $0x44] sm:$0xf] %vm2920_vm1, %v3627_v21  ;;  %3018 = vst.msk [vmem:[%s4389_s25 + $0x184] sm:$0xf] %vm2920_vm1, %v3707_v22  ;;  %v1554_v25 = vadd.f32 %v4373_v59, %v1553_v23  ;;  %v1874_v26 = vadd.f32 %v4373_v59, %v1873_v24  ;;  %v1555_v27 = vpop.f32.mrb[37].mxu0  ;;  %v1875_v28 = vpop.f32.mrb[37].mxu1 }
 0x154   : > { %v1556_v31 = vpop.f32.mrb[38].mxu0  ;;  %v1876_v32 = vpop.f32.mrb[38].mxu1 }
 0x155   : > { %v2138_v35 = vmax.f32 %v1554_v25, 0.0  ;;  %v2218_v36 = vmax.f32 %v1874_v26, 0.0  ;;  %v1557_v37 = vadd.f32 %v4373_v59, %v1556_v31  ;;  %v1877_v38 = vadd.f32 %v4373_v59, %v1876_v32  ;;  %v1558_v39 = vpop.f32.mrb[39].mxu0  ;;  %v1878_v40 = vpop.f32.mrb[39].mxu1 }
 0x156   : > { %v4072_v39 = vld [vmem:[%s4162_s27 + $0x4f0] ss:$8 sps:$4 sm:$0xff]  }
 0x157   : > { %v3628_v41 = vpack.c.bf16 %v2138_v35, %v2138_v35  ;;  %v3708_v42 = vpack.c.bf16 %v2218_v36, %v2218_v36  ;;  %v2139_v43 = vmax.f32 %v1557_v37, 0.0  ;;  %v2219_v44 = vmax.f32 %v1877_v38, 0.0  ;;  %1768 = vmatmul.mubr.bf16.gmra.mrb[144].mxu0 %v4053_v29  ;;  %2088 = vmatmul.mubr.bf16.gmra.mrb[144].mxu1 %v4054_v30  ;;  %v4071_v38 = vld [vmem:[%s4162_s27 + $0x270] ss:$8 sps:$4 sm:$0xff]  }
 0x158   : > { %3405 = vmatprep.mubr.msk.bf16.mxu0 %vm1206_vm0, %v4055_v33  ;;  %3445 = vmatprep.mubr.msk.bf16.mxu1 %vm1206_vm0, %v4057_v34 }
 0x159   : > { %2939 = vst.msk [vmem:[%s4389_s25 + $0x48] sm:$0xf] %vm2920_vm1, %v3628_v41  ;;  %3019 = vst.msk [vmem:[%s4389_s25 + $0x188] sm:$0xf] %vm2920_vm1, %v3708_v42  ;;  %v3629_v45 = vpack.c.bf16 %v2139_v43, %v2139_v43  ;;  %v3709_v46 = vpack.c.bf16 %v2219_v44, %v2219_v44 }
 0x15a   : > { %v1561_v47 = vpop.f32.mrb[40].mxu0  ;;  %v1881_v48 = vpop.f32.mrb[40].mxu1 }
 0x15b   : > { %2940 = vst.msk [vmem:[%s4389_s25 + $0x4c] sm:$0xf] %vm2920_vm1, %v3629_v45  ;;  %3020 = vst.msk [vmem:[%s4389_s25 + $0x18c] sm:$0xf] %vm2920_vm1, %v3709_v46  ;;  %v1562_v49 = vadd.f32 %v4373_v59, %v1561_v47  ;;  %v1882_v50 = vadd.f32 %v4373_v59, %v1881_v48  ;;  %v1563_v51 = vpop.f32.mrb[41].mxu0  ;;  %v1883_v52 = vpop.f32.mrb[41].mxu1 }
 0x15c   : > { %v1564_v55 = vpop.f32.mrb[42].mxu0  ;;  %v1884_v56 = vpop.f32.mrb[42].mxu1 }
 0x15d   : > { %v2140_v60 = vmax.f32 %v1562_v49, 0.0  ;;  %v2220_v61 = vmax.f32 %v1882_v50, 0.0  ;;  %v1565_v62 = vadd.f32 %v4373_v59, %v1564_v55  ;;  %v1885_v63 = vadd.f32 %v4373_v59, %v1884_v56  ;;  %v1566_v0 = vpop.f32.mrb[43].mxu0  ;;  %v1886_v1 = vpop.f32.mrb[43].mxu1 }
 0x15f   : > { %v3630_v2 = vpack.c.bf16 %v2140_v60, %v2140_v60  ;;  %v3710_v3 = vpack.c.bf16 %v2220_v61, %v2220_v61  ;;  %v2141_v4 = vmax.f32 %v1565_v62, 0.0  ;;  %v2221_v5 = vmax.f32 %v1885_v63, 0.0  ;;  %1776 = vmatmul.mubr.bf16.gmra.mrb[148].mxu0 %v4059_v53  ;;  %2096 = vmatmul.mubr.bf16.gmra.mrb[148].mxu1 %v4060_v54 }
 0x160   : > { %3406 = vmatprep.mubr.msk.bf16.mxu0 %vm1206_vm0, %v4061_v57  ;;  %3446 = vmatprep.mubr.msk.bf16.mxu1 %vm1206_vm0, %v4063_v58 }
 0x161   : > { %2941 = vst.msk [vmem:[%s4389_s25 + $0x50] sm:$0xf] %vm2920_vm1, %v3630_v2  ;;  %3021 = vst.msk [vmem:[%s4389_s25 + $0x190] sm:$0xf] %vm2920_vm1, %v3710_v3  ;;  %v3631_v6 = vpack.c.bf16 %v2141_v4, %v2141_v4  ;;  %v3711_v7 = vpack.c.bf16 %v2221_v5, %v2221_v5 }
 0x162   : > { %v1569_v8 = vpop.f32.mrb[44].mxu0  ;;  %v1889_v9 = vpop.f32.mrb[44].mxu1 }
 0x163   : > { %2942 = vst.msk [vmem:[%s4389_s25 + $0x54] sm:$0xf] %vm2920_vm1, %v3631_v6  ;;  %3022 = vst.msk [vmem:[%s4389_s25 + $0x194] sm:$0xf] %vm2920_vm1, %v3711_v7  ;;  %v1570_v10 = vadd.f32 %v4373_v59, %v1569_v8  ;;  %v1890_v11 = vadd.f32 %v4373_v59, %v1889_v9  ;;  %v1571_v12 = vpop.f32.mrb[45].mxu0  ;;  %v1891_v13 = vpop.f32.mrb[45].mxu1 }
 0x164   : > { %v1572_v16 = vpop.f32.mrb[46].mxu0  ;;  %v1892_v17 = vpop.f32.mrb[46].mxu1 }
 0x165   : > { %v2142_v20 = vmax.f32 %v1570_v10, 0.0  ;;  %v2222_v21 = vmax.f32 %v1890_v11, 0.0  ;;  %v1573_v22 = vadd.f32 %v4373_v59, %v1572_v16  ;;  %v1893_v23 = vadd.f32 %v4373_v59, %v1892_v17  ;;  %v1574_v24 = vpop.f32.mrb[47].mxu0  ;;  %v1894_v25 = vpop.f32.mrb[47].mxu1 }
 0x167   : > { %v3632_v26 = vpack.c.bf16 %v2142_v20, %v2142_v20  ;;  %v3712_v27 = vpack.c.bf16 %v2222_v21, %v2222_v21  ;;  %v2143_v28 = vmax.f32 %v1573_v22, 0.0  ;;  %v2223_v29 = vmax.f32 %v1893_v23, 0.0  ;;  %1784 = vmatmul.mubr.bf16.gmra.mrb[152].mxu0 %v4065_v14  ;;  %2104 = vmatmul.mubr.bf16.gmra.mrb[152].mxu1 %v4066_v15 }
 0x168   : > { %3407 = vmatprep.mubr.msk.bf16.mxu0 %vm1206_vm0, %v4067_v18  ;;  %3447 = vmatprep.mubr.msk.bf16.mxu1 %vm1206_vm0, %v4069_v19 }
 0x169   : > { %2943 = vst.msk [vmem:[%s4389_s25 + $0x58] sm:$0xf] %vm2920_vm1, %v3632_v26  ;;  %3023 = vst.msk [vmem:[%s4389_s25 + $0x198] sm:$0xf] %vm2920_vm1, %v3712_v27  ;;  %v3633_v30 = vpack.c.bf16 %v2143_v28, %v2143_v28  ;;  %v3713_v31 = vpack.c.bf16 %v2223_v29, %v2223_v29 }
 0x16a   : > { %v1577_v32 = vpop.f32.mrb[48].mxu0  ;;  %v1897_v33 = vpop.f32.mrb[48].mxu1 }
 0x16b   : > { %2944 = vst.msk [vmem:[%s4389_s25 + $0x5c] sm:$0xf] %vm2920_vm1, %v3633_v30  ;;  %3024 = vst.msk [vmem:[%s4389_s25 + $0x19c] sm:$0xf] %vm2920_vm1, %v3713_v31  ;;  %v1578_v34 = vadd.f32 %v4373_v59, %v1577_v32  ;;  %v1898_v35 = vadd.f32 %v4373_v59, %v1897_v33  ;;  %v1579_v36 = vpop.f32.mrb[49].mxu0  ;;  %v1899_v37 = vpop.f32.mrb[49].mxu1 }
 0x16c   : > { %v1580_v40 = vpop.f32.mrb[50].mxu0  ;;  %v1900_v41 = vpop.f32.mrb[50].mxu1 }
 0x16d   : > { %v2144_v42 = vmax.f32 %v1578_v34, 0.0  ;;  %v2224_v43 = vmax.f32 %v1898_v35, 0.0  ;;  %v1581_v44 = vadd.f32 %v4373_v59, %v1580_v40  ;;  %v1901_v45 = vadd.f32 %v4373_v59, %v1900_v41  ;;  %v1582_v46 = vpop.f32.mrb[51].mxu0  ;;  %v1902_v47 = vpop.f32.mrb[51].mxu1 }
 0x16f   : > { %v3634_v48 = vpack.c.bf16 %v2144_v42, %v2144_v42  ;;  %v3714_v49 = vpack.c.bf16 %v2224_v43, %v2224_v43  ;;  %v2145_v50 = vmax.f32 %v1581_v44, 0.0  ;;  %v2225_v51 = vmax.f32 %v1901_v45, 0.0  ;;  %1792 = vmatmul.mubr.bf16.gmra.mrb[156].mxu0 %v4071_v38  ;;  %2112 = vmatmul.mubr.bf16.gmra.mrb[156].mxu1 %v4072_v39 }
 0x171   : > { %2945 = vst.msk [vmem:[%s4389_s25 + $0x60] sm:$0xf] %vm2920_vm1, %v3634_v48  ;;  %3025 = vst.msk [vmem:[%s4389_s25 + $0x1a0] sm:$0xf] %vm2920_vm1, %v3714_v49  ;;  %v3635_v52 = vpack.c.bf16 %v2145_v50, %v2145_v50  ;;  %v3715_v53 = vpack.c.bf16 %v2225_v51, %v2225_v51 }
 0x172   : > { %v1585_v54 = vpop.f32.mrb[52].mxu0  ;;  %v1905_v55 = vpop.f32.mrb[52].mxu1 }
 0x173   : > { %2946 = vst.msk [vmem:[%s4389_s25 + $0x64] sm:$0xf] %vm2920_vm1, %v3635_v52  ;;  %3026 = vst.msk [vmem:[%s4389_s25 + $0x1a4] sm:$0xf] %vm2920_vm1, %v3715_v53  ;;  %v1586_v56 = vadd.f32 %v4373_v59, %v1585_v54  ;;  %v1906_v57 = vadd.f32 %v4373_v59, %v1905_v55  ;;  %v1587_v58 = vpop.f32.mrb[53].mxu0  ;;  %v1907_v60 = vpop.f32.mrb[53].mxu1 }
 0x174   : > { %v1588_v61 = vpop.f32.mrb[54].mxu0  ;;  %v1908_v62 = vpop.f32.mrb[54].mxu1 }
 0x175   : > { %v2146_v63 = vmax.f32 %v1586_v56, 0.0  ;;  %v2226_v0 = vmax.f32 %v1906_v57, 0.0  ;;  %v1589_v1 = vadd.f32 %v4373_v59, %v1588_v61  ;;  %v1909_v2 = vadd.f32 %v4373_v59, %v1908_v62  ;;  %v1590_v3 = vpop.f32.mrb[55].mxu0  ;;  %v1910_v4 = vpop.f32.mrb[55].mxu1 }
 0x177   : > { %v3636_v5 = vpack.c.bf16 %v2146_v63, %v2146_v63  ;;  %v3716_v6 = vpack.c.bf16 %v2226_v0, %v2226_v0  ;;  %v2147_v7 = vmax.f32 %v1589_v1, 0.0  ;;  %v2227_v8 = vmax.f32 %v1909_v2, 0.0 }
 0x179   : > { %2947 = vst.msk [vmem:[%s4389_s25 + $0x68] sm:$0xf] %vm2920_vm1, %v3636_v5  ;;  %3027 = vst.msk [vmem:[%s4389_s25 + $0x1a8] sm:$0xf] %vm2920_vm1, %v3716_v6  ;;  %v3637_v9 = vpack.c.bf16 %v2147_v7, %v2147_v7  ;;  %v3717_v10 = vpack.c.bf16 %v2227_v8, %v2227_v8 }
 0x17a   : > { %v1593_v11 = vpop.f32.mrb[56].mxu0  ;;  %v1913_v12 = vpop.f32.mrb[56].mxu1 }
 0x17b   : > { %2948 = vst.msk [vmem:[%s4389_s25 + $0x6c] sm:$0xf] %vm2920_vm1, %v3637_v9  ;;  %3028 = vst.msk [vmem:[%s4389_s25 + $0x1ac] sm:$0xf] %vm2920_vm1, %v3717_v10  ;;  %v1594_v13 = vadd.f32 %v4373_v59, %v1593_v11  ;;  %v1914_v14 = vadd.f32 %v4373_v59, %v1913_v12  ;;  %v1595_v15 = vpop.f32.mrb[57].mxu0  ;;  %v1915_v16 = vpop.f32.mrb[57].mxu1 }
 0x17c   : > { %v1596_v17 = vpop.f32.mrb[58].mxu0  ;;  %v1916_v18 = vpop.f32.mrb[58].mxu1 }
 0x17d   : > { %v2148_v19 = vmax.f32 %v1594_v13, 0.0  ;;  %v2228_v20 = vmax.f32 %v1914_v14, 0.0  ;;  %v1597_v21 = vadd.f32 %v4373_v59, %v1596_v17  ;;  %v1917_v22 = vadd.f32 %v4373_v59, %v1916_v18  ;;  %v1598_v23 = vpop.f32.mrb[59].mxu0  ;;  %v1918_v24 = vpop.f32.mrb[59].mxu1 }
 0x17f   : > { %v3638_v25 = vpack.c.bf16 %v2148_v19, %v2148_v19  ;;  %v3718_v26 = vpack.c.bf16 %v2228_v20, %v2228_v20  ;;  %v2149_v27 = vmax.f32 %v1597_v21, 0.0  ;;  %v2229_v28 = vmax.f32 %v1917_v22, 0.0 }
 0x181   : > { %2949 = vst.msk [vmem:[%s4389_s25 + $0x70] sm:$0xf] %vm2920_vm1, %v3638_v25  ;;  %3029 = vst.msk [vmem:[%s4389_s25 + $0x1b0] sm:$0xf] %vm2920_vm1, %v3718_v26  ;;  %v3639_v29 = vpack.c.bf16 %v2149_v27, %v2149_v27  ;;  %v3719_v30 = vpack.c.bf16 %v2229_v28, %v2229_v28 }
 0x182   : > { %v1601_v31 = vpop.f32.mrb[60].mxu0  ;;  %v1921_v32 = vpop.f32.mrb[60].mxu1 }
 0x183   : > { %2950 = vst.msk [vmem:[%s4389_s25 + $0x74] sm:$0xf] %vm2920_vm1, %v3639_v29  ;;  %3030 = vst.msk [vmem:[%s4389_s25 + $0x1b4] sm:$0xf] %vm2920_vm1, %v3719_v30  ;;  %v1602_v33 = vadd.f32 %v4373_v59, %v1601_v31  ;;  %v1922_v34 = vadd.f32 %v4373_v59, %v1921_v32  ;;  %v1603_v35 = vpop.f32.mrb[61].mxu0  ;;  %v1923_v36 = vpop.f32.mrb[61].mxu1 }
 0x184   : > { %v1604_v37 = vpop.f32.mrb[62].mxu0  ;;  %v1924_v38 = vpop.f32.mrb[62].mxu1 }
 0x185   : > { %v2150_v39 = vmax.f32 %v1602_v33, 0.0  ;;  %v2230_v40 = vmax.f32 %v1922_v34, 0.0  ;;  %v1605_v41 = vadd.f32 %v4373_v59, %v1604_v37  ;;  %v1925_v42 = vadd.f32 %v4373_v59, %v1924_v38  ;;  %v1606_v43 = vpop.f32.mrb[63].mxu0  ;;  %v1926_v44 = vpop.f32.mrb[63].mxu1 }
 0x187   : > { %v3640_v45 = vpack.c.bf16 %v2150_v39, %v2150_v39  ;;  %v3720_v46 = vpack.c.bf16 %v2230_v40, %v2230_v40  ;;  %v2151_v47 = vmax.f32 %v1605_v41, 0.0  ;;  %v2231_v48 = vmax.f32 %v1925_v42, 0.0 }
 0x189   : > { %2951 = vst.msk [vmem:[%s4389_s25 + $0x78] sm:$0xf] %vm2920_vm1, %v3640_v45  ;;  %3031 = vst.msk [vmem:[%s4389_s25 + $0x1b8] sm:$0xf] %vm2920_vm1, %v3720_v46  ;;  %v3641_v49 = vpack.c.bf16 %v2151_v47, %v2151_v47  ;;  %v3721_v50 = vpack.c.bf16 %v2231_v48, %v2231_v48 }
 0x18a   : > { %v1609_v51 = vpop.f32.mrb[64].mxu0  ;;  %v1929_v52 = vpop.f32.mrb[64].mxu1 }
 0x18b   : > { %2952 = vst.msk [vmem:[%s4389_s25 + $0x7c] sm:$0xf] %vm2920_vm1, %v3641_v49  ;;  %3032 = vst.msk [vmem:[%s4389_s25 + $0x1bc] sm:$0xf] %vm2920_vm1, %v3721_v50  ;;  %v1610_v53 = vadd.f32 %v4373_v59, %v1609_v51  ;;  %v1930_v54 = vadd.f32 %v4373_v59, %v1929_v52  ;;  %v1611_v55 = vpop.f32.mrb[65].mxu0  ;;  %v1931_v56 = vpop.f32.mrb[65].mxu1 }
 0x18c   : > { %v1612_v57 = vpop.f32.mrb[66].mxu0  ;;  %v1932_v58 = vpop.f32.mrb[66].mxu1 }
 0x18d   : > { %v2152_v60 = vmax.f32 %v1610_v53, 0.0  ;;  %v2232_v61 = vmax.f32 %v1930_v54, 0.0  ;;  %v1613_v62 = vadd.f32 %v4373_v59, %v1612_v57  ;;  %v1933_v63 = vadd.f32 %v4373_v59, %v1932_v58  ;;  %v1614_v0 = vpop.f32.mrb[67].mxu0  ;;  %v1934_v1 = vpop.f32.mrb[67].mxu1  ;;  %v4664_v59 = vld [vmem:[%s4950_s2] ss:$0 sm:$0xff] }
 0x18f   : > { %v3642_v2 = vpack.c.bf16 %v2152_v60, %v2152_v60  ;;  %v3722_v3 = vpack.c.bf16 %v2232_v61, %v2232_v61  ;;  %v2153_v4 = vmax.f32 %v1613_v62, 0.0  ;;  %v2233_v5 = vmax.f32 %v1933_v63, 0.0 }
 0x191   : > { %2953 = vst.msk [vmem:[%s4389_s25 + $0x80] sm:$0xf] %vm2920_vm1, %v3642_v2  ;;  %3033 = vst.msk [vmem:[%s4389_s25 + $0x1c0] sm:$0xf] %vm2920_vm1, %v3722_v3  ;;  %v3643_v6 = vpack.c.bf16 %v2153_v4, %v2153_v4  ;;  %v3723_v7 = vpack.c.bf16 %v2233_v5, %v2233_v5 }
 0x192   : > { %v1617_v8 = vpop.f32.mrb[68].mxu0  ;;  %v1937_v9 = vpop.f32.mrb[68].mxu1 }
 0x193   : > { %2954 = vst.msk [vmem:[%s4389_s25 + $0x84] sm:$0xf] %vm2920_vm1, %v3643_v6  ;;  %3034 = vst.msk [vmem:[%s4389_s25 + $0x1c4] sm:$0xf] %vm2920_vm1, %v3723_v7  ;;  %v1618_v10 = vadd.f32 %v4664_v59, %v1617_v8  ;;  %v1938_v11 = vadd.f32 %v4664_v59, %v1937_v9  ;;  %v1619_v12 = vpop.f32.mrb[69].mxu0  ;;  %v1939_v13 = vpop.f32.mrb[69].mxu1 }
 0x194   : > { %v1620_v14 = vpop.f32.mrb[70].mxu0  ;;  %v1940_v15 = vpop.f32.mrb[70].mxu1 }
 0x195   : > { %v2154_v16 = vmax.f32 %v1618_v10, 0.0  ;;  %v2234_v17 = vmax.f32 %v1938_v11, 0.0  ;;  %v1621_v18 = vadd.f32 %v4664_v59, %v1620_v14  ;;  %v1941_v19 = vadd.f32 %v4664_v59, %v1940_v15  ;;  %v1622_v20 = vpop.f32.mrb[71].mxu0  ;;  %v1942_v21 = vpop.f32.mrb[71].mxu1 }
 0x197   : > { %v3644_v22 = vpack.c.bf16 %v2154_v16, %v2154_v16  ;;  %v3724_v23 = vpack.c.bf16 %v2234_v17, %v2234_v17  ;;  %v2155_v24 = vmax.f32 %v1621_v18, 0.0  ;;  %v2235_v25 = vmax.f32 %v1941_v19, 0.0 }
 0x199   : > { %2955 = vst.msk [vmem:[%s4389_s25 + $0x88] sm:$0xf] %vm2920_vm1, %v3644_v22  ;;  %3035 = vst.msk [vmem:[%s4389_s25 + $0x1c8] sm:$0xf] %vm2920_vm1, %v3724_v23  ;;  %v3645_v26 = vpack.c.bf16 %v2155_v24, %v2155_v24  ;;  %v3725_v27 = vpack.c.bf16 %v2235_v25, %v2235_v25 }
 0x19a   : > { %v1625_v28 = vpop.f32.mrb[72].mxu0  ;;  %v1945_v29 = vpop.f32.mrb[72].mxu1 }
 0x19b   : > { %2956 = vst.msk [vmem:[%s4389_s25 + $0x8c] sm:$0xf] %vm2920_vm1, %v3645_v26  ;;  %3036 = vst.msk [vmem:[%s4389_s25 + $0x1cc] sm:$0xf] %vm2920_vm1, %v3725_v27  ;;  %v1626_v30 = vadd.f32 %v4664_v59, %v1625_v28  ;;  %v1946_v31 = vadd.f32 %v4664_v59, %v1945_v29  ;;  %v1627_v32 = vpop.f32.mrb[73].mxu0  ;;  %v1947_v33 = vpop.f32.mrb[73].mxu1 }
 0x19c   : > { %v1628_v34 = vpop.f32.mrb[74].mxu0  ;;  %v1948_v35 = vpop.f32.mrb[74].mxu1 }
 0x19d   : > { %v2156_v36 = vmax.f32 %v1626_v30, 0.0  ;;  %v2236_v37 = vmax.f32 %v1946_v31, 0.0  ;;  %v1629_v38 = vadd.f32 %v4664_v59, %v1628_v34  ;;  %v1949_v39 = vadd.f32 %v4664_v59, %v1948_v35  ;;  %v1630_v40 = vpop.f32.mrb[75].mxu0  ;;  %v1950_v41 = vpop.f32.mrb[75].mxu1 }
 0x19f   : > { %v3646_v42 = vpack.c.bf16 %v2156_v36, %v2156_v36  ;;  %v3726_v43 = vpack.c.bf16 %v2236_v37, %v2236_v37  ;;  %v2157_v44 = vmax.f32 %v1629_v38, 0.0  ;;  %v2237_v45 = vmax.f32 %v1949_v39, 0.0 }
 0x1a1   : > { %2957 = vst.msk [vmem:[%s4389_s25 + $0x90] sm:$0xf] %vm2920_vm1, %v3646_v42  ;;  %3037 = vst.msk [vmem:[%s4389_s25 + $0x1d0] sm:$0xf] %vm2920_vm1, %v3726_v43  ;;  %v3647_v46 = vpack.c.bf16 %v2157_v44, %v2157_v44  ;;  %v3727_v47 = vpack.c.bf16 %v2237_v45, %v2237_v45 }
 0x1a2   : > { %v1633_v48 = vpop.f32.mrb[76].mxu0  ;;  %v1953_v49 = vpop.f32.mrb[76].mxu1 }
 0x1a3   : > { %2958 = vst.msk [vmem:[%s4389_s25 + $0x94] sm:$0xf] %vm2920_vm1, %v3647_v46  ;;  %3038 = vst.msk [vmem:[%s4389_s25 + $0x1d4] sm:$0xf] %vm2920_vm1, %v3727_v47  ;;  %v1634_v50 = vadd.f32 %v4664_v59, %v1633_v48  ;;  %v1954_v51 = vadd.f32 %v4664_v59, %v1953_v49  ;;  %v1635_v52 = vpop.f32.mrb[77].mxu0  ;;  %v1955_v53 = vpop.f32.mrb[77].mxu1 }
 0x1a4   : > { %v1636_v54 = vpop.f32.mrb[78].mxu0  ;;  %v1956_v55 = vpop.f32.mrb[78].mxu1 }
 0x1a5   : > { %v2158_v56 = vmax.f32 %v1634_v50, 0.0  ;;  %v2238_v57 = vmax.f32 %v1954_v51, 0.0  ;;  %v1637_v58 = vadd.f32 %v4664_v59, %v1636_v54  ;;  %v1957_v60 = vadd.f32 %v4664_v59, %v1956_v55  ;;  %v1638_v61 = vpop.f32.mrb[79].mxu0  ;;  %v1958_v62 = vpop.f32.mrb[79].mxu1 }
 0x1a7   : > { %v3648_v63 = vpack.c.bf16 %v2158_v56, %v2158_v56  ;;  %v3728_v0 = vpack.c.bf16 %v2238_v57, %v2238_v57  ;;  %v2159_v1 = vmax.f32 %v1637_v58, 0.0  ;;  %v2239_v2 = vmax.f32 %v1957_v60, 0.0 }
 0x1a9   : > { %2959 = vst.msk [vmem:[%s4389_s25 + $0x98] sm:$0xf] %vm2920_vm1, %v3648_v63  ;;  %3039 = vst.msk [vmem:[%s4389_s25 + $0x1d8] sm:$0xf] %vm2920_vm1, %v3728_v0  ;;  %v3649_v3 = vpack.c.bf16 %v2159_v1, %v2159_v1  ;;  %v3729_v4 = vpack.c.bf16 %v2239_v2, %v2239_v2 }
 0x1aa   : > { %v1641_v5 = vpop.f32.mrb[80].mxu0  ;;  %v1961_v6 = vpop.f32.mrb[80].mxu1 }
 0x1ab   : > { %2960 = vst.msk [vmem:[%s4389_s25 + $0x9c] sm:$0xf] %vm2920_vm1, %v3649_v3  ;;  %3040 = vst.msk [vmem:[%s4389_s25 + $0x1dc] sm:$0xf] %vm2920_vm1, %v3729_v4  ;;  %v1642_v7 = vadd.f32 %v4664_v59, %v1641_v5  ;;  %v1962_v8 = vadd.f32 %v4664_v59, %v1961_v6  ;;  %v1643_v9 = vpop.f32.mrb[81].mxu0  ;;  %v1963_v10 = vpop.f32.mrb[81].mxu1 }
 0x1ac   : > { %v1644_v11 = vpop.f32.mrb[82].mxu0  ;;  %v1964_v12 = vpop.f32.mrb[82].mxu1 }
 0x1ad   : > { %v2160_v13 = vmax.f32 %v1642_v7, 0.0  ;;  %v2240_v14 = vmax.f32 %v1962_v8, 0.0  ;;  %v1645_v15 = vadd.f32 %v4664_v59, %v1644_v11  ;;  %v1965_v16 = vadd.f32 %v4664_v59, %v1964_v12  ;;  %v1646_v17 = vpop.f32.mrb[83].mxu0  ;;  %v1966_v18 = vpop.f32.mrb[83].mxu1 }
 0x1af   : > { %v3650_v19 = vpack.c.bf16 %v2160_v13, %v2160_v13  ;;  %v3730_v20 = vpack.c.bf16 %v2240_v14, %v2240_v14  ;;  %v2161_v21 = vmax.f32 %v1645_v15, 0.0  ;;  %v2241_v22 = vmax.f32 %v1965_v16, 0.0 }
 0x1b1   : > { %2961 = vst.msk [vmem:[%s4389_s25 + $0xa0] sm:$0xf] %vm2920_vm1, %v3650_v19  ;;  %3041 = vst.msk [vmem:[%s4389_s25 + $0x1e0] sm:$0xf] %vm2920_vm1, %v3730_v20  ;;  %v3651_v23 = vpack.c.bf16 %v2161_v21, %v2161_v21  ;;  %v3731_v24 = vpack.c.bf16 %v2241_v22, %v2241_v22 }
 0x1b2   : > { %v1649_v25 = vpop.f32.mrb[84].mxu0  ;;  %v1969_v26 = vpop.f32.mrb[84].mxu1 }
 0x1b3   : > { %2962 = vst.msk [vmem:[%s4389_s25 + $0xa4] sm:$0xf] %vm2920_vm1, %v3651_v23  ;;  %3042 = vst.msk [vmem:[%s4389_s25 + $0x1e4] sm:$0xf] %vm2920_vm1, %v3731_v24  ;;  %v1650_v27 = vadd.f32 %v4664_v59, %v1649_v25  ;;  %v1970_v28 = vadd.f32 %v4664_v59, %v1969_v26  ;;  %v1651_v29 = vpop.f32.mrb[85].mxu0  ;;  %v1971_v30 = vpop.f32.mrb[85].mxu1 }
 0x1b4   : > { %v1652_v31 = vpop.f32.mrb[86].mxu0  ;;  %v1972_v32 = vpop.f32.mrb[86].mxu1 }
 0x1b5   : > { %v2162_v33 = vmax.f32 %v1650_v27, 0.0  ;;  %v2242_v34 = vmax.f32 %v1970_v28, 0.0  ;;  %v1653_v35 = vadd.f32 %v4664_v59, %v1652_v31  ;;  %v1973_v36 = vadd.f32 %v4664_v59, %v1972_v32  ;;  %v1654_v37 = vpop.f32.mrb[87].mxu0  ;;  %v1974_v38 = vpop.f32.mrb[87].mxu1 }
 0x1b7   : > { %v3652_v39 = vpack.c.bf16 %v2162_v33, %v2162_v33  ;;  %v3732_v40 = vpack.c.bf16 %v2242_v34, %v2242_v34  ;;  %v2163_v41 = vmax.f32 %v1653_v35, 0.0  ;;  %v2243_v42 = vmax.f32 %v1973_v36, 0.0 }
 0x1b9   : > { %2963 = vst.msk [vmem:[%s4389_s25 + $0xa8] sm:$0xf] %vm2920_vm1, %v3652_v39  ;;  %3043 = vst.msk [vmem:[%s4389_s25 + $0x1e8] sm:$0xf] %vm2920_vm1, %v3732_v40  ;;  %v3653_v43 = vpack.c.bf16 %v2163_v41, %v2163_v41  ;;  %v3733_v44 = vpack.c.bf16 %v2243_v42, %v2243_v42 }
 0x1ba   : > { %v1657_v45 = vpop.f32.mrb[88].mxu0  ;;  %v1977_v46 = vpop.f32.mrb[88].mxu1 }
 0x1bb   : > { %2964 = vst.msk [vmem:[%s4389_s25 + $0xac] sm:$0xf] %vm2920_vm1, %v3653_v43  ;;  %3044 = vst.msk [vmem:[%s4389_s25 + $0x1ec] sm:$0xf] %vm2920_vm1, %v3733_v44  ;;  %v1658_v47 = vadd.f32 %v4664_v59, %v1657_v45  ;;  %v1978_v48 = vadd.f32 %v4664_v59, %v1977_v46  ;;  %v1659_v49 = vpop.f32.mrb[89].mxu0  ;;  %v1979_v50 = vpop.f32.mrb[89].mxu1 }
 0x1bc   : > { %v1660_v51 = vpop.f32.mrb[90].mxu0  ;;  %v1980_v52 = vpop.f32.mrb[90].mxu1 }
 0x1bd   : > { %v2164_v53 = vmax.f32 %v1658_v47, 0.0  ;;  %v2244_v54 = vmax.f32 %v1978_v48, 0.0  ;;  %v1661_v55 = vadd.f32 %v4664_v59, %v1660_v51  ;;  %v1981_v56 = vadd.f32 %v4664_v59, %v1980_v52  ;;  %v1662_v57 = vpop.f32.mrb[91].mxu0  ;;  %v1982_v58 = vpop.f32.mrb[91].mxu1 }
 0x1bf   : > { %v3654_v60 = vpack.c.bf16 %v2164_v53, %v2164_v53  ;;  %v3734_v61 = vpack.c.bf16 %v2244_v54, %v2244_v54  ;;  %v2165_v62 = vmax.f32 %v1661_v55, 0.0  ;;  %v2245_v63 = vmax.f32 %v1981_v56, 0.0 }
 0x1c1   : > { %2965 = vst.msk [vmem:[%s4389_s25 + $0xb0] sm:$0xf] %vm2920_vm1, %v3654_v60  ;;  %3045 = vst.msk [vmem:[%s4389_s25 + $0x1f0] sm:$0xf] %vm2920_vm1, %v3734_v61  ;;  %v3655_v0 = vpack.c.bf16 %v2165_v62, %v2165_v62  ;;  %v3735_v1 = vpack.c.bf16 %v2245_v63, %v2245_v63 }
 0x1c2   : > { %v1665_v2 = vpop.f32.mrb[92].mxu0  ;;  %v1985_v3 = vpop.f32.mrb[92].mxu1 }
 0x1c3   : > { %2966 = vst.msk [vmem:[%s4389_s25 + $0xb4] sm:$0xf] %vm2920_vm1, %v3655_v0  ;;  %3046 = vst.msk [vmem:[%s4389_s25 + $0x1f4] sm:$0xf] %vm2920_vm1, %v3735_v1  ;;  %v1666_v4 = vadd.f32 %v4664_v59, %v1665_v2  ;;  %v1986_v5 = vadd.f32 %v4664_v59, %v1985_v3  ;;  %v1667_v6 = vpop.f32.mrb[93].mxu0  ;;  %v1987_v7 = vpop.f32.mrb[93].mxu1 }
 0x1c4   : > { %v1668_v8 = vpop.f32.mrb[94].mxu0  ;;  %v1988_v9 = vpop.f32.mrb[94].mxu1 }
 0x1c5   : > { %v2166_v10 = vmax.f32 %v1666_v4, 0.0  ;;  %v2246_v11 = vmax.f32 %v1986_v5, 0.0  ;;  %v1669_v12 = vadd.f32 %v4664_v59, %v1668_v8  ;;  %v1989_v13 = vadd.f32 %v4664_v59, %v1988_v9  ;;  %v1670_v14 = vpop.f32.mrb[95].mxu0  ;;  %v1990_v15 = vpop.f32.mrb[95].mxu1 }
 0x1c7   : > { %v3656_v16 = vpack.c.bf16 %v2166_v10, %v2166_v10  ;;  %v3736_v17 = vpack.c.bf16 %v2246_v11, %v2246_v11  ;;  %v2167_v18 = vmax.f32 %v1669_v12, 0.0  ;;  %v2247_v19 = vmax.f32 %v1989_v13, 0.0 }
 0x1c9   : > { %2967 = vst.msk [vmem:[%s4389_s25 + $0xb8] sm:$0xf] %vm2920_vm1, %v3656_v16  ;;  %3047 = vst.msk [vmem:[%s4389_s25 + $0x1f8] sm:$0xf] %vm2920_vm1, %v3736_v17  ;;  %v3657_v20 = vpack.c.bf16 %v2167_v18, %v2167_v18  ;;  %v3737_v21 = vpack.c.bf16 %v2247_v19, %v2247_v19 }
 0x1ca   : > { %v1673_v22 = vpop.f32.mrb[96].mxu0  ;;  %v1993_v23 = vpop.f32.mrb[96].mxu1 }
 0x1cb   : > { %2968 = vst.msk [vmem:[%s4389_s25 + $0xbc] sm:$0xf] %vm2920_vm1, %v3657_v20  ;;  %3048 = vst.msk [vmem:[%s4389_s25 + $0x1fc] sm:$0xf] %vm2920_vm1, %v3737_v21  ;;  %v1674_v24 = vadd.f32 %v4664_v59, %v1673_v22  ;;  %v1994_v25 = vadd.f32 %v4664_v59, %v1993_v23  ;;  %v1675_v26 = vpop.f32.mrb[97].mxu0  ;;  %v1995_v27 = vpop.f32.mrb[97].mxu1 }
 0x1cc   : > { %v1676_v28 = vpop.f32.mrb[98].mxu0  ;;  %v1996_v29 = vpop.f32.mrb[98].mxu1 }
 0x1cd   : > { %v2168_v30 = vmax.f32 %v1674_v24, 0.0  ;;  %v2248_v31 = vmax.f32 %v1994_v25, 0.0  ;;  %v1677_v32 = vadd.f32 %v4664_v59, %v1676_v28  ;;  %v1997_v33 = vadd.f32 %v4664_v59, %v1996_v29  ;;  %v1678_v34 = vpop.f32.mrb[99].mxu0  ;;  %v1998_v35 = vpop.f32.mrb[99].mxu1 }
 0x1cf   : > { %v3658_v36 = vpack.c.bf16 %v2168_v30, %v2168_v30  ;;  %v3738_v37 = vpack.c.bf16 %v2248_v31, %v2248_v31  ;;  %v2169_v38 = vmax.f32 %v1677_v32, 0.0  ;;  %v2249_v39 = vmax.f32 %v1997_v33, 0.0 }
 0x1d1   : > { %2969 = vst.msk [vmem:[%s4389_s25 + $0xc0] sm:$0xf] %vm2920_vm1, %v3658_v36  ;;  %3049 = vst.msk [vmem:[%s4389_s25 + $0x200] sm:$0xf] %vm2920_vm1, %v3738_v37  ;;  %v3659_v40 = vpack.c.bf16 %v2169_v38, %v2169_v38  ;;  %v3739_v41 = vpack.c.bf16 %v2249_v39, %v2249_v39 }
 0x1d2   : > { %v1681_v42 = vpop.f32.mrb[100].mxu0  ;;  %v2001_v43 = vpop.f32.mrb[100].mxu1 }
 0x1d3   : > { %2970 = vst.msk [vmem:[%s4389_s25 + $0xc4] sm:$0xf] %vm2920_vm1, %v3659_v40  ;;  %3050 = vst.msk [vmem:[%s4389_s25 + $0x204] sm:$0xf] %vm2920_vm1, %v3739_v41  ;;  %v1682_v44 = vadd.f32 %v4664_v59, %v1681_v42  ;;  %v2002_v45 = vadd.f32 %v4664_v59, %v2001_v43  ;;  %v1683_v46 = vpop.f32.mrb[101].mxu0  ;;  %v2003_v47 = vpop.f32.mrb[101].mxu1 }
 0x1d4   : > { %v1684_v48 = vpop.f32.mrb[102].mxu0  ;;  %v2004_v49 = vpop.f32.mrb[102].mxu1 }
 0x1d5   : > { %v2170_v50 = vmax.f32 %v1682_v44, 0.0  ;;  %v2250_v51 = vmax.f32 %v2002_v45, 0.0  ;;  %v1685_v52 = vadd.f32 %v4664_v59, %v1684_v48  ;;  %v2005_v53 = vadd.f32 %v4664_v59, %v2004_v49  ;;  %v1686_v54 = vpop.f32.mrb[103].mxu0  ;;  %v2006_v55 = vpop.f32.mrb[103].mxu1 }
 0x1d7   : > { %v3660_v56 = vpack.c.bf16 %v2170_v50, %v2170_v50  ;;  %v3740_v57 = vpack.c.bf16 %v2250_v51, %v2250_v51  ;;  %v2171_v58 = vmax.f32 %v1685_v52, 0.0  ;;  %v2251_v60 = vmax.f32 %v2005_v53, 0.0 }
 0x1d9   : > { %2971 = vst.msk [vmem:[%s4389_s25 + $0xc8] sm:$0xf] %vm2920_vm1, %v3660_v56  ;;  %3051 = vst.msk [vmem:[%s4389_s25 + $0x208] sm:$0xf] %vm2920_vm1, %v3740_v57  ;;  %v3661_v61 = vpack.c.bf16 %v2171_v58, %v2171_v58  ;;  %v3741_v62 = vpack.c.bf16 %v2251_v60, %v2251_v60 }
 0x1da   : > { %v1689_v63 = vpop.f32.mrb[104].mxu0  ;;  %v2009_v0 = vpop.f32.mrb[104].mxu1 }
 0x1db   : > { %2972 = vst.msk [vmem:[%s4389_s25 + $0xcc] sm:$0xf] %vm2920_vm1, %v3661_v61  ;;  %3052 = vst.msk [vmem:[%s4389_s25 + $0x20c] sm:$0xf] %vm2920_vm1, %v3741_v62  ;;  %v1690_v1 = vadd.f32 %v4664_v59, %v1689_v63  ;;  %v2010_v2 = vadd.f32 %v4664_v59, %v2009_v0  ;;  %v1691_v3 = vpop.f32.mrb[105].mxu0  ;;  %v2011_v4 = vpop.f32.mrb[105].mxu1 }
 0x1dc   : > { %v1692_v5 = vpop.f32.mrb[106].mxu0  ;;  %v2012_v6 = vpop.f32.mrb[106].mxu1 }
 0x1dd   : > { %v2172_v7 = vmax.f32 %v1690_v1, 0.0  ;;  %v2252_v8 = vmax.f32 %v2010_v2, 0.0  ;;  %v1693_v9 = vadd.f32 %v4664_v59, %v1692_v5  ;;  %v2013_v10 = vadd.f32 %v4664_v59, %v2012_v6  ;;  %v1694_v11 = vpop.f32.mrb[107].mxu0  ;;  %v2014_v12 = vpop.f32.mrb[107].mxu1 }
 0x1df   : > { %v3662_v13 = vpack.c.bf16 %v2172_v7, %v2172_v7  ;;  %v3742_v14 = vpack.c.bf16 %v2252_v8, %v2252_v8  ;;  %v2173_v15 = vmax.f32 %v1693_v9, 0.0  ;;  %v2253_v16 = vmax.f32 %v2013_v10, 0.0 }
 0x1e1   : > { %2973 = vst.msk [vmem:[%s4389_s25 + $0xd0] sm:$0xf] %vm2920_vm1, %v3662_v13  ;;  %3053 = vst.msk [vmem:[%s4389_s25 + $0x210] sm:$0xf] %vm2920_vm1, %v3742_v14  ;;  %v3663_v17 = vpack.c.bf16 %v2173_v15, %v2173_v15  ;;  %v3743_v18 = vpack.c.bf16 %v2253_v16, %v2253_v16 }
 0x1e2   : > { %v1697_v19 = vpop.f32.mrb[108].mxu0  ;;  %v2017_v20 = vpop.f32.mrb[108].mxu1 }
 0x1e3   : > { %2974 = vst.msk [vmem:[%s4389_s25 + $0xd4] sm:$0xf] %vm2920_vm1, %v3663_v17  ;;  %3054 = vst.msk [vmem:[%s4389_s25 + $0x214] sm:$0xf] %vm2920_vm1, %v3743_v18  ;;  %v1698_v21 = vadd.f32 %v4664_v59, %v1697_v19  ;;  %v2018_v22 = vadd.f32 %v4664_v59, %v2017_v20  ;;  %v1699_v23 = vpop.f32.mrb[109].mxu0  ;;  %v2019_v24 = vpop.f32.mrb[109].mxu1 }
 0x1e4   : > { %v1700_v25 = vpop.f32.mrb[110].mxu0  ;;  %v2020_v26 = vpop.f32.mrb[110].mxu1 }
 0x1e5   : > { %v2174_v27 = vmax.f32 %v1698_v21, 0.0  ;;  %v2254_v28 = vmax.f32 %v2018_v22, 0.0  ;;  %v1701_v29 = vadd.f32 %v4664_v59, %v1700_v25  ;;  %v2021_v30 = vadd.f32 %v4664_v59, %v2020_v26  ;;  %v1702_v31 = vpop.f32.mrb[111].mxu0  ;;  %v2022_v32 = vpop.f32.mrb[111].mxu1 }
 0x1e7   : > { %v3664_v33 = vpack.c.bf16 %v2174_v27, %v2174_v27  ;;  %v3744_v34 = vpack.c.bf16 %v2254_v28, %v2254_v28  ;;  %v2175_v35 = vmax.f32 %v1701_v29, 0.0  ;;  %v2255_v36 = vmax.f32 %v2021_v30, 0.0 }
 0x1e9   : > { %2975 = vst.msk [vmem:[%s4389_s25 + $0xd8] sm:$0xf] %vm2920_vm1, %v3664_v33  ;;  %3055 = vst.msk [vmem:[%s4389_s25 + $0x218] sm:$0xf] %vm2920_vm1, %v3744_v34  ;;  %v3665_v37 = vpack.c.bf16 %v2175_v35, %v2175_v35  ;;  %v3745_v38 = vpack.c.bf16 %v2255_v36, %v2255_v36 }
 0x1ea   : > { %v1705_v39 = vpop.f32.mrb[112].mxu0  ;;  %v2025_v40 = vpop.f32.mrb[112].mxu1 }
 0x1eb   : > { %2976 = vst.msk [vmem:[%s4389_s25 + $0xdc] sm:$0xf] %vm2920_vm1, %v3665_v37  ;;  %3056 = vst.msk [vmem:[%s4389_s25 + $0x21c] sm:$0xf] %vm2920_vm1, %v3745_v38  ;;  %v1706_v41 = vadd.f32 %v4664_v59, %v1705_v39  ;;  %v2026_v42 = vadd.f32 %v4664_v59, %v2025_v40  ;;  %v1707_v43 = vpop.f32.mrb[113].mxu0  ;;  %v2027_v44 = vpop.f32.mrb[113].mxu1 }
 0x1ec   : > { %v1708_v45 = vpop.f32.mrb[114].mxu0  ;;  %v2028_v46 = vpop.f32.mrb[114].mxu1 }
 0x1ed   : > { %v2176_v47 = vmax.f32 %v1706_v41, 0.0  ;;  %v2256_v48 = vmax.f32 %v2026_v42, 0.0  ;;  %v1709_v49 = vadd.f32 %v4664_v59, %v1708_v45  ;;  %v2029_v50 = vadd.f32 %v4664_v59, %v2028_v46  ;;  %v1710_v51 = vpop.f32.mrb[115].mxu0  ;;  %v2030_v52 = vpop.f32.mrb[115].mxu1 }
 0x1ef   : > { %v3666_v53 = vpack.c.bf16 %v2176_v47, %v2176_v47  ;;  %v3746_v54 = vpack.c.bf16 %v2256_v48, %v2256_v48  ;;  %v2177_v55 = vmax.f32 %v1709_v49, 0.0  ;;  %v2257_v56 = vmax.f32 %v2029_v50, 0.0 }
 0x1f1   : > { %2977 = vst.msk [vmem:[%s4389_s25 + $0xe0] sm:$0xf] %vm2920_vm1, %v3666_v53  ;;  %3057 = vst.msk [vmem:[%s4389_s25 + $0x220] sm:$0xf] %vm2920_vm1, %v3746_v54  ;;  %v3667_v57 = vpack.c.bf16 %v2177_v55, %v2177_v55  ;;  %v3747_v58 = vpack.c.bf16 %v2257_v56, %v2257_v56 }
 0x1f2   : > { %v1713_v60 = vpop.f32.mrb[116].mxu0  ;;  %v2033_v61 = vpop.f32.mrb[116].mxu1 }
 0x1f3   : > { %2978 = vst.msk [vmem:[%s4389_s25 + $0xe4] sm:$0xf] %vm2920_vm1, %v3667_v57  ;;  %3058 = vst.msk [vmem:[%s4389_s25 + $0x224] sm:$0xf] %vm2920_vm1, %v3747_v58  ;;  %v1714_v62 = vadd.f32 %v4664_v59, %v1713_v60  ;;  %v2034_v63 = vadd.f32 %v4664_v59, %v2033_v61  ;;  %v1715_v0 = vpop.f32.mrb[117].mxu0  ;;  %v2035_v1 = vpop.f32.mrb[117].mxu1 }
 0x1f4   : > { %v1716_v2 = vpop.f32.mrb[118].mxu0  ;;  %v2036_v3 = vpop.f32.mrb[118].mxu1 }
 0x1f5   : > { %v2178_v4 = vmax.f32 %v1714_v62, 0.0  ;;  %v2258_v5 = vmax.f32 %v2034_v63, 0.0  ;;  %v1717_v6 = vadd.f32 %v4664_v59, %v1716_v2  ;;  %v2037_v7 = vadd.f32 %v4664_v59, %v2036_v3  ;;  %v1718_v8 = vpop.f32.mrb[119].mxu0  ;;  %v2038_v9 = vpop.f32.mrb[119].mxu1 }
 0x1f7   : > { %v3668_v10 = vpack.c.bf16 %v2178_v4, %v2178_v4  ;;  %v3748_v11 = vpack.c.bf16 %v2258_v5, %v2258_v5  ;;  %v2179_v12 = vmax.f32 %v1717_v6, 0.0  ;;  %v2259_v13 = vmax.f32 %v2037_v7, 0.0 }
 0x1f9   : > { %2979 = vst.msk [vmem:[%s4389_s25 + $0xe8] sm:$0xf] %vm2920_vm1, %v3668_v10  ;;  %3059 = vst.msk [vmem:[%s4389_s25 + $0x228] sm:$0xf] %vm2920_vm1, %v3748_v11  ;;  %v3669_v14 = vpack.c.bf16 %v2179_v12, %v2179_v12  ;;  %v3749_v15 = vpack.c.bf16 %v2259_v13, %v2259_v13 }
 0x1fa   : > { %v1721_v16 = vpop.f32.mrb[120].mxu0  ;;  %v2041_v17 = vpop.f32.mrb[120].mxu1 }
 0x1fb   : > { %2980 = vst.msk [vmem:[%s4389_s25 + $0xec] sm:$0xf] %vm2920_vm1, %v3669_v14  ;;  %3060 = vst.msk [vmem:[%s4389_s25 + $0x22c] sm:$0xf] %vm2920_vm1, %v3749_v15  ;;  %v1722_v18 = vadd.f32 %v4664_v59, %v1721_v16  ;;  %v2042_v19 = vadd.f32 %v4664_v59, %v2041_v17  ;;  %v1723_v20 = vpop.f32.mrb[121].mxu0  ;;  %v2043_v21 = vpop.f32.mrb[121].mxu1 }
 0x1fc   : > { %v1724_v22 = vpop.f32.mrb[122].mxu0  ;;  %v2044_v23 = vpop.f32.mrb[122].mxu1 }
 0x1fd   : > { %v2180_v24 = vmax.f32 %v1722_v18, 0.0  ;;  %v2260_v25 = vmax.f32 %v2042_v19, 0.0  ;;  %v1725_v26 = vadd.f32 %v4664_v59, %v1724_v22  ;;  %v2045_v27 = vadd.f32 %v4664_v59, %v2044_v23  ;;  %v1726_v28 = vpop.f32.mrb[123].mxu0  ;;  %v2046_v29 = vpop.f32.mrb[123].mxu1 }
 0x1ff   : > { %v3670_v30 = vpack.c.bf16 %v2180_v24, %v2180_v24  ;;  %v3750_v31 = vpack.c.bf16 %v2260_v25, %v2260_v25  ;;  %v2181_v32 = vmax.f32 %v1725_v26, 0.0  ;;  %v2261_v33 = vmax.f32 %v2045_v27, 0.0 }
 0x201   : > { %2981 = vst.msk [vmem:[%s4389_s25 + $0xf0] sm:$0xf] %vm2920_vm1, %v3670_v30  ;;  %3061 = vst.msk [vmem:[%s4389_s25 + $0x230] sm:$0xf] %vm2920_vm1, %v3750_v31  ;;  %v3671_v34 = vpack.c.bf16 %v2181_v32, %v2181_v32  ;;  %v3751_v35 = vpack.c.bf16 %v2261_v33, %v2261_v33 }
 0x202   : > { %v1729_v36 = vpop.f32.mrb[124].mxu0  ;;  %v2049_v37 = vpop.f32.mrb[124].mxu1 }
 0x203   : > { %2982 = vst.msk [vmem:[%s4389_s25 + $0xf4] sm:$0xf] %vm2920_vm1, %v3671_v34  ;;  %3062 = vst.msk [vmem:[%s4389_s25 + $0x234] sm:$0xf] %vm2920_vm1, %v3751_v35  ;;  %v1730_v38 = vadd.f32 %v4664_v59, %v1729_v36  ;;  %v2050_v39 = vadd.f32 %v4664_v59, %v2049_v37  ;;  %v1731_v40 = vpop.f32.mrb[125].mxu0  ;;  %v2051_v41 = vpop.f32.mrb[125].mxu1 }
 0x204   : > { %v1732_v42 = vpop.f32.mrb[126].mxu0  ;;  %v2052_v43 = vpop.f32.mrb[126].mxu1 }
 0x205   : > { %v2182_v44 = vmax.f32 %v1730_v38, 0.0  ;;  %v2262_v45 = vmax.f32 %v2050_v39, 0.0  ;;  %v1733_v46 = vadd.f32 %v4664_v59, %v1732_v42  ;;  %v2053_v47 = vadd.f32 %v4664_v59, %v2052_v43  ;;  %v1734_v48 = vpop.f32.mrb[127].mxu0  ;;  %v2054_v49 = vpop.f32.mrb[127].mxu1 }
 0x207   : > { %v3672_v50 = vpack.c.bf16 %v2182_v44, %v2182_v44  ;;  %v3752_v51 = vpack.c.bf16 %v2262_v45, %v2262_v45  ;;  %v2183_v52 = vmax.f32 %v1733_v46, 0.0  ;;  %v2263_v53 = vmax.f32 %v2053_v47, 0.0 }
 0x209   : > { %2983 = vst.msk [vmem:[%s4389_s25 + $0xf8] sm:$0xf] %vm2920_vm1, %v3672_v50  ;;  %3063 = vst.msk [vmem:[%s4389_s25 + $0x238] sm:$0xf] %vm2920_vm1, %v3752_v51  ;;  %v3673_v54 = vpack.c.bf16 %v2183_v52, %v2183_v52  ;;  %v3753_v55 = vpack.c.bf16 %v2263_v53, %v2263_v53 }
 0x20a   : > { %v1737_v56 = vpop.f32.mrb[128].mxu0  ;;  %v2057_v57 = vpop.f32.mrb[128].mxu1 }
 0x20b   : > { %2984 = vst.msk [vmem:[%s4389_s25 + $0xfc] sm:$0xf] %vm2920_vm1, %v3673_v54  ;;  %3064 = vst.msk [vmem:[%s4389_s25 + $0x23c] sm:$0xf] %vm2920_vm1, %v3753_v55  ;;  %v1738_v58 = vadd.f32 %v4664_v59, %v1737_v56  ;;  %v2058_v60 = vadd.f32 %v4664_v59, %v2057_v57  ;;  %v1739_v61 = vpop.f32.mrb[129].mxu0  ;;  %v2059_v62 = vpop.f32.mrb[129].mxu1 }
 0x20c   : > { %v1740_v63 = vpop.f32.mrb[130].mxu0  ;;  %v2060_v0 = vpop.f32.mrb[130].mxu1 }
 0x20d   : > { %v2184_v1 = vmax.f32 %v1738_v58, 0.0  ;;  %v2264_v2 = vmax.f32 %v2058_v60, 0.0  ;;  %v1741_v3 = vadd.f32 %v4664_v59, %v1740_v63  ;;  %v2061_v4 = vadd.f32 %v4664_v59, %v2060_v0  ;;  %v1742_v5 = vpop.f32.mrb[131].mxu0  ;;  %v2062_v6 = vpop.f32.mrb[131].mxu1 }
 0x20f   : > { %v3674_v7 = vpack.c.bf16 %v2184_v1, %v2184_v1  ;;  %v3754_v8 = vpack.c.bf16 %v2264_v2, %v2264_v2  ;;  %v2185_v9 = vmax.f32 %v1741_v3, 0.0  ;;  %v2265_v10 = vmax.f32 %v2061_v4, 0.0 }
 0x211   : > { %2985 = vst.msk [vmem:[%s4389_s25 + $0x100] sm:$0xf] %vm2920_vm1, %v3674_v7  ;;  %3065 = vst.msk [vmem:[%s4389_s25 + $0x240] sm:$0xf] %vm2920_vm1, %v3754_v8  ;;  %v3675_v11 = vpack.c.bf16 %v2185_v9, %v2185_v9  ;;  %v3755_v12 = vpack.c.bf16 %v2265_v10, %v2265_v10 }
 0x212   : > { %v1745_v13 = vpop.f32.mrb[132].mxu0  ;;  %v2065_v14 = vpop.f32.mrb[132].mxu1 }
 0x213   : > { %2986 = vst.msk [vmem:[%s4389_s25 + $0x104] sm:$0xf] %vm2920_vm1, %v3675_v11  ;;  %3066 = vst.msk [vmem:[%s4389_s25 + $0x244] sm:$0xf] %vm2920_vm1, %v3755_v12  ;;  %v1746_v15 = vadd.f32 %v4664_v59, %v1745_v13  ;;  %v2066_v16 = vadd.f32 %v4664_v59, %v2065_v14  ;;  %v1747_v17 = vpop.f32.mrb[133].mxu0  ;;  %v2067_v18 = vpop.f32.mrb[133].mxu1 }
 0x214   : > { %v1748_v19 = vpop.f32.mrb[134].mxu0  ;;  %v2068_v20 = vpop.f32.mrb[134].mxu1 }
 0x215   : > { %v2186_v21 = vmax.f32 %v1746_v15, 0.0  ;;  %v2266_v22 = vmax.f32 %v2066_v16, 0.0  ;;  %v1749_v23 = vadd.f32 %v4664_v59, %v1748_v19  ;;  %v2069_v24 = vadd.f32 %v4664_v59, %v2068_v20  ;;  %v1750_v25 = vpop.f32.mrb[135].mxu0  ;;  %v2070_v26 = vpop.f32.mrb[135].mxu1 }
 0x217   : > { %v3676_v27 = vpack.c.bf16 %v2186_v21, %v2186_v21  ;;  %v3756_v28 = vpack.c.bf16 %v2266_v22, %v2266_v22  ;;  %v2187_v29 = vmax.f32 %v1749_v23, 0.0  ;;  %v2267_v30 = vmax.f32 %v2069_v24, 0.0 }
 0x219   : > { %2987 = vst.msk [vmem:[%s4389_s25 + $0x108] sm:$0xf] %vm2920_vm1, %v3676_v27  ;;  %3067 = vst.msk [vmem:[%s4389_s25 + $0x248] sm:$0xf] %vm2920_vm1, %v3756_v28  ;;  %v3677_v31 = vpack.c.bf16 %v2187_v29, %v2187_v29  ;;  %v3757_v32 = vpack.c.bf16 %v2267_v30, %v2267_v30 }
 0x21a   : > { %v1753_v33 = vpop.f32.mrb[136].mxu0  ;;  %v2073_v34 = vpop.f32.mrb[136].mxu1 }
 0x21b   : > { %2988 = vst.msk [vmem:[%s4389_s25 + $0x10c] sm:$0xf] %vm2920_vm1, %v3677_v31  ;;  %3068 = vst.msk [vmem:[%s4389_s25 + $0x24c] sm:$0xf] %vm2920_vm1, %v3757_v32  ;;  %v1754_v35 = vadd.f32 %v4664_v59, %v1753_v33  ;;  %v2074_v36 = vadd.f32 %v4664_v59, %v2073_v34  ;;  %v1755_v37 = vpop.f32.mrb[137].mxu0  ;;  %v2075_v38 = vpop.f32.mrb[137].mxu1 }
 0x21c   : > { %v1756_v39 = vpop.f32.mrb[138].mxu0  ;;  %v2076_v40 = vpop.f32.mrb[138].mxu1 }
 0x21d   : > { %v2188_v41 = vmax.f32 %v1754_v35, 0.0  ;;  %v2268_v42 = vmax.f32 %v2074_v36, 0.0  ;;  %v1757_v43 = vadd.f32 %v4664_v59, %v1756_v39  ;;  %v2077_v44 = vadd.f32 %v4664_v59, %v2076_v40  ;;  %v1758_v45 = vpop.f32.mrb[139].mxu0  ;;  %v2078_v46 = vpop.f32.mrb[139].mxu1 }
 0x21f   : > { %v3678_v47 = vpack.c.bf16 %v2188_v41, %v2188_v41  ;;  %v3758_v48 = vpack.c.bf16 %v2268_v42, %v2268_v42  ;;  %v2189_v49 = vmax.f32 %v1757_v43, 0.0  ;;  %v2269_v50 = vmax.f32 %v2077_v44, 0.0 }
 0x221   : > { %2989 = vst.msk [vmem:[%s4389_s25 + $0x110] sm:$0xf] %vm2920_vm1, %v3678_v47  ;;  %3069 = vst.msk [vmem:[%s4389_s25 + $0x250] sm:$0xf] %vm2920_vm1, %v3758_v48  ;;  %v3679_v51 = vpack.c.bf16 %v2189_v49, %v2189_v49  ;;  %v3759_v52 = vpack.c.bf16 %v2269_v50, %v2269_v50 }
 0x222   : > { %v1761_v53 = vpop.f32.mrb[140].mxu0  ;;  %v2081_v54 = vpop.f32.mrb[140].mxu1 }
 0x223   : > { %2990 = vst.msk [vmem:[%s4389_s25 + $0x114] sm:$0xf] %vm2920_vm1, %v3679_v51  ;;  %3070 = vst.msk [vmem:[%s4389_s25 + $0x254] sm:$0xf] %vm2920_vm1, %v3759_v52  ;;  %v1762_v55 = vadd.f32 %v4664_v59, %v1761_v53  ;;  %v2082_v56 = vadd.f32 %v4664_v59, %v2081_v54  ;;  %v1763_v57 = vpop.f32.mrb[141].mxu0  ;;  %v2083_v58 = vpop.f32.mrb[141].mxu1 }
 0x224   : > { %v1764_v60 = vpop.f32.mrb[142].mxu0  ;;  %v2084_v61 = vpop.f32.mrb[142].mxu1 }
 0x225   : > { %v2190_v62 = vmax.f32 %v1762_v55, 0.0  ;;  %v2270_v63 = vmax.f32 %v2082_v56, 0.0  ;;  %v1765_v0 = vadd.f32 %v4664_v59, %v1764_v60  ;;  %v2085_v1 = vadd.f32 %v4664_v59, %v2084_v61  ;;  %v1766_v2 = vpop.f32.mrb[143].mxu0  ;;  %v2086_v3 = vpop.f32.mrb[143].mxu1  ;;  %v4074_v61 = vld [vmem:[%s4950_s2] ss:$0 sm:$0xff] }
 0x227   : > { %v3680_v4 = vpack.c.bf16 %v2190_v62, %v2190_v62  ;;  %v3760_v5 = vpack.c.bf16 %v2270_v63, %v2270_v63  ;;  %v2191_v6 = vmax.f32 %v1765_v0, 0.0  ;;  %v2271_v7 = vmax.f32 %v2085_v1, 0.0 }
 0x229   : > { %2991 = vst.msk [vmem:[%s4389_s25 + $0x118] sm:$0xf] %vm2920_vm1, %v3680_v4  ;;  %3071 = vst.msk [vmem:[%s4389_s25 + $0x258] sm:$0xf] %vm2920_vm1, %v3760_v5  ;;  %v3681_v8 = vpack.c.bf16 %v2191_v6, %v2191_v6  ;;  %v3761_v9 = vpack.c.bf16 %v2271_v7, %v2271_v7 }
 0x22a   : > { %v1769_v10 = vpop.f32.mrb[144].mxu0  ;;  %v2089_v11 = vpop.f32.mrb[144].mxu1 }
 0x22b   : > { %2992 = vst.msk [vmem:[%s4389_s25 + $0x11c] sm:$0xf] %vm2920_vm1, %v3681_v8  ;;  %3072 = vst.msk [vmem:[%s4389_s25 + $0x25c] sm:$0xf] %vm2920_vm1, %v3761_v9  ;;  %v1770_v12 = vadd.f32 %v4664_v59, %v1769_v10  ;;  %v2090_v13 = vadd.f32 %v4664_v59, %v2089_v11  ;;  %v1771_v14 = vpop.f32.mrb[145].mxu0  ;;  %v2091_v15 = vpop.f32.mrb[145].mxu1 }
 0x22c   : > { %v1772_v16 = vpop.f32.mrb[146].mxu0  ;;  %v2092_v17 = vpop.f32.mrb[146].mxu1 }
 0x22d   : > { %v2192_v18 = vmax.f32 %v1770_v12, 0.0  ;;  %v2272_v19 = vmax.f32 %v2090_v13, 0.0  ;;  %v1773_v20 = vadd.f32 %v4664_v59, %v1772_v16  ;;  %v2093_v21 = vadd.f32 %v4664_v59, %v2092_v17  ;;  %v1774_v22 = vpop.f32.mrb[147].mxu0  ;;  %v2094_v23 = vpop.f32.mrb[147].mxu1 }
 0x22f   : > { %v3682_v24 = vpack.c.bf16 %v2192_v18, %v2192_v18  ;;  %v3762_v25 = vpack.c.bf16 %v2272_v19, %v2272_v19  ;;  %v2193_v26 = vmax.f32 %v1773_v20, 0.0  ;;  %v2273_v27 = vmax.f32 %v2093_v21, 0.0 }
 0x231   : > { %2993 = vst.msk [vmem:[%s4389_s25 + $0x120] sm:$0xf] %vm2920_vm1, %v3682_v24  ;;  %3073 = vst.msk [vmem:[%s4389_s25 + $0x260] sm:$0xf] %vm2920_vm1, %v3762_v25  ;;  %v3683_v28 = vpack.c.bf16 %v2193_v26, %v2193_v26  ;;  %v3763_v29 = vpack.c.bf16 %v2273_v27, %v2273_v27 }
 0x232   : > { %v1777_v30 = vpop.f32.mrb[148].mxu0  ;;  %v2097_v31 = vpop.f32.mrb[148].mxu1 }
 0x233   : > { %2994 = vst.msk [vmem:[%s4389_s25 + $0x124] sm:$0xf] %vm2920_vm1, %v3683_v28  ;;  %3074 = vst.msk [vmem:[%s4389_s25 + $0x264] sm:$0xf] %vm2920_vm1, %v3763_v29  ;;  %v1778_v32 = vadd.f32 %v4664_v59, %v1777_v30  ;;  %v2098_v33 = vadd.f32 %v4664_v59, %v2097_v31  ;;  %v1779_v34 = vpop.f32.mrb[149].mxu0  ;;  %v2099_v35 = vpop.f32.mrb[149].mxu1 }
 0x234   : > { %v1780_v36 = vpop.f32.mrb[150].mxu0  ;;  %v2100_v37 = vpop.f32.mrb[150].mxu1 }
 0x235   : > { %v2194_v38 = vmax.f32 %v1778_v32, 0.0  ;;  %v2274_v39 = vmax.f32 %v2098_v33, 0.0  ;;  %v1781_v40 = vadd.f32 %v4664_v59, %v1780_v36  ;;  %v2101_v41 = vadd.f32 %v4664_v59, %v2100_v37  ;;  %v1782_v42 = vpop.f32.mrb[151].mxu0  ;;  %v2102_v43 = vpop.f32.mrb[151].mxu1 }
 0x237   : > { %v3684_v44 = vpack.c.bf16 %v2194_v38, %v2194_v38  ;;  %v3764_v45 = vpack.c.bf16 %v2274_v39, %v2274_v39  ;;  %v2195_v46 = vmax.f32 %v1781_v40, 0.0  ;;  %v2275_v47 = vmax.f32 %v2101_v41, 0.0 }
 0x239   : > { %2995 = vst.msk [vmem:[%s4389_s25 + $0x128] sm:$0xf] %vm2920_vm1, %v3684_v44  ;;  %3075 = vst.msk [vmem:[%s4389_s25 + $0x268] sm:$0xf] %vm2920_vm1, %v3764_v45  ;;  %v3685_v48 = vpack.c.bf16 %v2195_v46, %v2195_v46  ;;  %v3765_v49 = vpack.c.bf16 %v2275_v47, %v2275_v47 }
 0x23a   : > { %v1785_v50 = vpop.f32.mrb[152].mxu0  ;;  %v2105_v51 = vpop.f32.mrb[152].mxu1 }
 0x23b   : > { %2996 = vst.msk [vmem:[%s4389_s25 + $0x12c] sm:$0xf] %vm2920_vm1, %v3685_v48  ;;  %3076 = vst.msk [vmem:[%s4389_s25 + $0x26c] sm:$0xf] %vm2920_vm1, %v3765_v49  ;;  %v1786_v52 = vadd.f32 %v4664_v59, %v1785_v50  ;;  %v2106_v53 = vadd.f32 %v4664_v59, %v2105_v51  ;;  %v1787_v54 = vpop.f32.mrb[153].mxu0  ;;  %v2107_v55 = vpop.f32.mrb[153].mxu1 }
 0x23c   : > { %v1788_v56 = vpop.f32.mrb[154].mxu0  ;;  %v2108_v57 = vpop.f32.mrb[154].mxu1 }
 0x23d   : > { %v2196_v58 = vmax.f32 %v1786_v52, 0.0  ;;  %v2276_v60 = vmax.f32 %v2106_v53, 0.0  ;;  %v1789_v62 = vadd.f32 %v4074_v61, %v1788_v56  ;;  %v2109_v63 = vadd.f32 %v4074_v61, %v2108_v57  ;;  %v1790_v0 = vpop.f32.mrb[155].mxu0  ;;  %v2110_v1 = vpop.f32.mrb[155].mxu1 }
 0x23f   : > { %v3686_v2 = vpack.c.bf16 %v2196_v58, %v2196_v58  ;;  %v3766_v59 = vpack.c.bf16 %v2276_v60, %v2276_v60  ;;  %v2197_v3 = vmax.f32 %v1789_v62, 0.0  ;;  %v2277_v4 = vmax.f32 %v2109_v63, 0.0 }
 0x241   : > { %2997 = vst.msk [vmem:[%s4389_s25 + $0x130] sm:$0xf] %vm2920_vm1, %v3686_v2  ;;  %3077 = vst.msk [vmem:[%s4389_s25 + $0x270] sm:$0xf] %vm2920_vm1, %v3766_v59  ;;  %v3687_v5 = vpack.c.bf16 %v2197_v3, %v2197_v3  ;;  %v3767_v6 = vpack.c.bf16 %v2277_v4, %v2277_v4 }
 0x242   : > { %v1793_v7 = vpop.f32.mrb[156].mxu0  ;;  %v2113_v8 = vpop.f32.mrb[156].mxu1 }
 0x243   : > { %2998 = vst.msk [vmem:[%s4389_s25 + $0x134] sm:$0xf] %vm2920_vm1, %v3687_v5  ;;  %3078 = vst.msk [vmem:[%s4389_s25 + $0x274] sm:$0xf] %vm2920_vm1, %v3767_v6  ;;  %v1794_v9 = vadd.f32 %v4074_v61, %v1793_v7  ;;  %v2114_v10 = vadd.f32 %v4074_v61, %v2113_v8  ;;  %v1795_v11 = vpop.f32.mrb[157].mxu0  ;;  %v2115_v12 = vpop.f32.mrb[157].mxu1 }
 0x244   : > { %v1796_v13 = vpop.f32.mrb[158].mxu0  ;;  %v2116_v14 = vpop.f32.mrb[158].mxu1 }
 0x245   : > { %v2198_v15 = vmax.f32 %v1794_v9, 0.0  ;;  %v2278_v16 = vmax.f32 %v2114_v10, 0.0  ;;  %v1797_v17 = vadd.f32 %v4074_v61, %v1796_v13  ;;  %v2117_v18 = vadd.f32 %v4074_v61, %v2116_v14  ;;  %v1798_v19 = vpop.f32.mrb[159].mxu0  ;;  %v2118_v20 = vpop.f32.mrb[159].mxu1 }
 0x247   : > { %v3688_v21 = vpack.c.bf16 %v2198_v15, %v2198_v15  ;;  %v3768_v22 = vpack.c.bf16 %v2278_v16, %v2278_v16  ;;  %v2199_v23 = vmax.f32 %v1797_v17, 0.0  ;;  %v2279_v24 = vmax.f32 %v2117_v18, 0.0 }
 0x249   : > { %2999 = vst.msk [vmem:[%s4389_s25 + $0x138] sm:$0xf] %vm2920_vm1, %v3688_v21  ;;  %3079 = vst.msk [vmem:[%s4389_s25 + $0x278] sm:$0xf] %vm2920_vm1, %v3768_v22  ;;  %v3689_v25 = vpack.c.bf16 %v2199_v23, %v2199_v23  ;;  %v3769_v26 = vpack.c.bf16 %v2279_v24, %v2279_v24 }
 0x24b   : > { %3000 = vst.msk [vmem:[%s4389_s25 + $0x13c] sm:$0xf] %vm2920_vm1, %v3689_v25  ;;  %3080 = vst.msk [vmem:[%s4389_s25 + $0x27c] sm:$0xf] %vm2920_vm1, %v3769_v26 }
 0x24c PF: > { %s13_s14 = sadd.s32 1, %s4097_s14   ;;  %s4952_s12 = smov %s4093_s13 }
 0x24d   : > { %p10_p5 = scmp.ge.s32.totalorder %s13_s14, 4   ;;  %s4953_s13 = smov %s4955_s15 }
 0x24f   :  { %12 = sbr.rel (!%p10_p5) target bundleno = 2 (0x2), region = 68 }

</bundles_post_ra>
